<compile_context>
chip_gen: v6e
topology: v6e:2x2x1
jax: 0.10.0
libtpu: 0.0.40
codegen_flags: <defaults>
</compile_context>

<pallas_src>
import math
from functools import partial

import jax
import jax.numpy as jnp
from jax import lax
from jax.experimental import pallas as pl
from jax.experimental.pallas import tpu as pltpu


LANE = 128


def _round_up(x, m):
    return ((x + m - 1) // m) * m


# ------------------------------ Pallas kernel ------------------------------

def _ln_padded(z, w, b, d_real, eps=1e-5):
    """LayerNorm over the real d_real features of a lane-padded (rows, Dp) slab.

    Padded lanes of z/w/b are exactly zero, so sums over the full lane width
    equal sums over the real features; E[x^2]-mu^2 keeps the variance exact
    without masking, and the zero LN weight/bias keeps padded lanes at 0.
    (Single-pass variance kept intentionally: padded lanes are exact zeros,
    which a two-pass (z-mu)^2 form would break without an extra lane mask.)
    """
    s1 = jnp.sum(z, axis=-1, keepdims=True)
    s2 = jnp.sum(z * z, axis=-1, keepdims=True)
    mu = s1 / d_real
    var = jnp.maximum(s2 / d_real - mu * mu, 0.0)
    return (z - mu) * lax.rsqrt(var + eps) * w + b


def _encoder_kernel(x_ref, wqkv_ref, wo_ref, w1_ref, w2_ref, vecd_ref, vech_ref,
                    o_ref, *, num_heads, d_model, seq_len, batches_per_block):
    """One encoder layer for one row block; layers fused via the grid carry."""
    layer = pl.program_id(1)

    # Layer 0: seed the carried activation (the output block index is constant
    # along the layer axis, so o_ref stays resident in VMEM across all layers).
    @pl.when(layer == 0)
    def _():
        o_ref[...] = x_ref[...]

    x = o_ref[...]                                    # (rows, Dp) f32, zero-padded lanes
    rows, Dp = x.shape
    x_bf = x.astype(jnp.bfloat16)

    vd = vecd_ref[0]                                  # (9, Dp) f32
    bq, bk, bv, bo = vd[0:1], vd[1:2], vd[2:3], vd[3:4]
    b2 = vd[4:5]
    ln1w, ln1b, ln2w, ln2b = vd[5:6], vd[6:7], vd[7:8], vd[8:9]
    b1 = vech_ref[0]                                  # (1, Hp) f32

    # Fused Q|K|V projection: one wide (rows, Dp) x (Dp, 3*Dp) bf16 MXU matmul
    # (better MXU fill, 1 weight DMA instead of 3), then lane-slice q/k/v.
    qkv = jnp.dot(x_bf, wqkv_ref[0], preferred_element_type=jnp.float32)
    q = qkv[:, 0 * Dp:1 * Dp] + bq
    k = qkv[:, 1 * Dp:2 * Dp] + bk
    v = qkv[:, 2 * Dp:3 * Dp] + bv
    q_bf = q.astype(jnp.bfloat16)
    k_bf = k.astype(jnp.bfloat16)
    v_bf = v.astype(jnp.bfloat16)

    # Reference-module quirks kept on purpose:
    #   * scale = 1/sqrt(d_model)  (PyTorch uses sqrt(in_channel) = sqrt(d_model))
    #   * nn.Softmax(dim=1) on (B, Sq, Sk) == softmax over the QUERY axis.
    scale = 1.0 / math.sqrt(d_model)
    dk = d_model // num_heads
    bpb = batches_per_block

    heads = []
    if bpb == 1 or seq_len % 8 == 0:
        # Per-batch scoring: (bpb, S, S) scores instead of one (bpb*S)^2 folded
        # matrix -> no block-diagonal mask, bpb x less exp/softmax/score work.
        q3 = q_bf.reshape(bpb, seq_len, Dp)
        k3 = k_bf.reshape(bpb, seq_len, Dp)
        v3 = v_bf.reshape(bpb, seq_len, Dp)
        # TODO(synk): at production sizes (dk >= 128) batch the heads into one
        # dot_general instead of this static per-head loop (dk-deep matmuls
        # under-fill the 256-wide v6e/v7x MXU).
        for h in range(num_heads):                    # static, small head count
            sl = slice(h * dk, (h + 1) * dk)
            s = jnp.einsum("bqd,bkd->bqk", q3[:, :, sl], k3[:, :, sl],
                           preferred_element_type=jnp.float32) * scale
            s = s - jnp.max(s, axis=1, keepdims=True)     # softmax over queries
            e = jnp.exp(s)
            p = e * pl.reciprocal(jnp.sum(e, axis=1, keepdims=True), approx=True)
            hv = jnp.einsum("bqk,bkd->bqd", p.astype(jnp.bfloat16), v3[:, :, sl],
                            preferred_element_type=jnp.float32)
            heads.append(hv.reshape(rows, dk))
    else:
        # Fallback (S not a multiple of 8): fold batches into rows and use a
        # block-diagonal mask so batches in this row block don't mix.
        rb_id = lax.broadcasted_iota(jnp.int32, (rows, rows), 0) // seq_len
        cb_id = lax.broadcasted_iota(jnp.int32, (rows, rows), 1) // seq_len
        same_batch = rb_id == cb_id
        for h in range(num_heads):
            sl = slice(h * dk, (h + 1) * dk)
            s = lax.dot_general(q_bf[:, sl], k_bf[:, sl],
                                (((1,), (1,)), ((), ())),
                                preferred_element_type=jnp.float32) * scale
            s = jnp.where(same_batch, s, -1e30)
            s = s - jnp.max(s, axis=0, keepdims=True)
            e = jnp.exp(s)
            p = e * pl.reciprocal(jnp.sum(e, axis=0, keepdims=True), approx=True)
            heads.append(jnp.dot(p.astype(jnp.bfloat16), v_bf[:, sl],
                                 preferred_element_type=jnp.float32))

    # Keep the concatenated head output in registers (no VMEM slab, no
    # per-head masked stores); pad to Dp so the wo matmul is lane-dense.
    if num_heads * dk < Dp:
        heads.append(jnp.zeros((rows, Dp - num_heads * dk), jnp.float32))
    cat_bf = jnp.concatenate(heads, axis=-1).astype(jnp.bfloat16)   # (rows, Dp)

    proj = jnp.dot(cat_bf, wo_ref[0], preferred_element_type=jnp.float32) + bo
    h1 = _ln_padded(proj + x, ln1w, ln1b, d_model)

    ff = jnp.dot(h1.astype(jnp.bfloat16), w1_ref[0],
                 preferred_element_type=jnp.float32) + b1
    ff = jnp.maximum(ff, 0.0)
    ff = jnp.dot(ff.astype(jnp.bfloat16), w2_ref[0],
                 preferred_element_type=jnp.float32) + b2
    o_ref[...] = _ln_padded(h1 + ff, ln2w, ln2b, d_model)


def _pick_row_blocks(B, S):
    """1 fat block on single-TensorCore chips (v5e/v6e 'lite' parts) so the
    per-layer weights stream from HBM only once; 2 blocks on megacore parts
    (v4/v5p/v7x) so both TensorCores get work."""
    single_tc = False
    try:
        kind = jax.devices()[0].device_kind.lower()
        single_tc = ("lite" in kind) or ("v5e" in kind) or ("v6e" in kind)
    except Exception:
        single_tc = False
    if (not single_tc) and B % 2 == 0 and ((B // 2) * S) % 8 == 0:
        return 2
    return 1


def _estimate_vmem_bytes(rows_pb, Dp, Hp):
    """Rough VMEM budget: double-buffered weights + activation blocks + live
    intermediates.  Used to raise vmem_limit_bytes only when needed."""
    weights = 2 * 2 * (3 * Dp * Dp + Dp * Dp + Dp * Hp + Hp * Dp)   # bf16, x2 bufs
    vecs = 2 * 4 * (9 * Dp + Hp)
    acts = 2 * 2 * rows_pb * Dp * 4                                  # x + out, x2 bufs
    live = 4 * rows_pb * (3 * Dp + 3 * Dp + Hp)                      # qkv, q/k/v/cat, ff
    return weights + vecs + acts + live


def transformer_encoder_pallas(x_emb, packed, *, num_heads, row_blocks=None):
    """Run the whole encoder stack in one pallas_call."""
    B, S, D = x_emb.shape
    L, Dp = packed["wqkv"].shape[0], packed["wqkv"].shape[1]
    Hp = packed["w1"].shape[-1]
    total_rows = B * S

    if row_blocks is None:
        row_blocks = _pick_row_blocks(B, S)
    assert B % row_blocks == 0
    batches_per_block = B // row_blocks
    rows_pb = batches_per_block * S
    assert rows_pb % 8 == 0, "rows per block must be a multiple of 8 sublanes"

    x2 = x_emb.reshape(total_rows, D)
    x_pad = jnp.zeros((total_rows, Dp), jnp.float32).at[:, :D].set(x2)

    kernel = partial(_encoder_kernel, num_heads=num_heads, d_model=D,
                     seq_len=S, batches_per_block=batches_per_block)

    cp_kwargs = dict(dimension_semantics=("parallel", "arbitrary"))
    est = _estimate_vmem_bytes(rows_pb, Dp, Hp)
    if est > (16 << 20):
        try:
            cap = pltpu.get_tpu_info().vmem_capacity_bytes      # 64 MiB on v7x
        except Exception:
            cap = 64 << 20
        cp_kwargs["vmem_limit_bytes"] = int(min(int(est * 1.5), cap))

    out = pl.pallas_call(
        kernel,
        out_shape=jax.ShapeDtypeStruct((total_rows, Dp), jnp.float32),
        grid_spec=pltpu.PrefetchScalarGridSpec(
            num_scalar_prefetch=0,
            grid=(row_blocks, L),                     # layer axis last => carry
            in_specs=[
                pl.BlockSpec((rows_pb, Dp), lambda rb, l: (rb, 0)),        # x
                pl.BlockSpec((1, Dp, 3 * Dp), lambda rb, l: (l, 0, 0)),    # wq|wk|wv fused
                pl.BlockSpec((1, Dp, Dp), lambda rb, l: (l, 0, 0)),        # wo
                pl.BlockSpec((1, Dp, Hp), lambda rb, l: (l, 0, 0)),        # w1
                pl.BlockSpec((1, Hp, Dp), lambda rb, l: (l, 0, 0)),        # w2
                pl.BlockSpec((1, 9, Dp), lambda rb, l: (l, 0, 0)),         # packed D-vectors
                pl.BlockSpec((1, 1, Hp), lambda rb, l: (l, 0, 0)),         # b1
            ],
            out_specs=pl.BlockSpec((rows_pb, Dp), lambda rb, l: (rb, 0)),
        ),
        compiler_params=pltpu.CompilerParams(**cp_kwargs),
    )(x_pad, packed["wqkv"], packed["wo"], packed["w1"], packed["w2"],
      packed["vecd"], packed["vech"])

    return out[:, :D].reshape(B, S, D)


# ------------------------- parameters / embedding --------------------------

def init_linear(key, fan_in, fan_out):
    kw, kb = jax.random.split(key)
    bound = 1.0 / math.sqrt(fan_in)
    w = jax.random.uniform(kw, (fan_in, fan_out), jnp.float32, -bound, bound)
    b = jax.random.uniform(kb, (fan_out,), jnp.float32, -bound, bound)
    return w, b


def init_layer_params(key, d_model, num_heads, hidden):
    keys = jax.random.split(key, 6)
    dk = d_model // num_heads

    def qkv(k):
        ks = jax.random.split(k, num_heads)
        ws, bs = zip(*[init_linear(kk, d_model, dk) for kk in ks])
        return jnp.concatenate(ws, axis=1), jnp.concatenate(bs, axis=0)

    wq, bq = qkv(keys[0])
    wk, bk = qkv(keys[1])
    wv, bv = qkv(keys[2])
    wo, bo = init_linear(keys[3], d_model, d_model)
    w1, b1 = init_linear(keys[4], d_model, hidden)
    w2, b2 = init_linear(keys[5], hidden, d_model)
    return dict(
        wq=wq, bq=bq, wk=wk, bk=bk, wv=wv, bv=bv, wo=wo, bo=bo,
        ln1w=jnp.ones((d_model,), jnp.float32), ln1b=jnp.zeros((d_model,), jnp.float32),
        w1=w1, b1=b1, w2=w2, b2=b2,
        ln2w=jnp.ones((d_model,), jnp.float32), ln2b=jnp.zeros((d_model,), jnp.float32),
    )


def pack_params(layer_params, d_model, hidden, lane=LANE):
    """Zero-pad to lane width, fuse wq|wk|wv, stack across layers, bf16 MXU weights."""
    Dp = _round_up(d_model, lane)
    Hp = _round_up(hidden, lane)

    def padw(w, r, c):
        return jnp.zeros((r, c), jnp.float32).at[:w.shape[0], :w.shape[1]].set(w)

    def padv(v, n):
        return jnp.zeros((n,), jnp.float32).at[:v.shape[0]].set(v)

    wqkv = jnp.stack([jnp.concatenate([padw(p["wq"], Dp, Dp), padw(p["wk"], Dp, Dp),
                                       padw(p["wv"], Dp, Dp)], axis=1)
                      for p in layer_params]).astype(jnp.bfloat16)      # (L, Dp, 3Dp)
    wo = jnp.stack([padw(p["wo"], Dp, Dp) for p in layer_params]).astype(jnp.bfloat16)
    w1 = jnp.stack([padw(p["w1"], Dp, Hp) for p in layer_params]).astype(jnp.bfloat16)
    w2 = jnp.stack([padw(p["w2"], Hp, Dp) for p in layer_params]).astype(jnp.bfloat16)
    vecd = jnp.stack([jnp.stack([padv(p["bq"], Dp), padv(p["bk"], Dp), padv(p["bv"], Dp),
                                 padv(p["bo"], Dp), padv(p["b2"], Dp),
                                 padv(p["ln1w"], Dp), padv(p["ln1b"], Dp),
                                 padv(p["ln2w"], Dp), padv(p["ln2b"], Dp)])
                      for p in layer_params])
    vech = jnp.stack([padv(p["b1"], Hp)[None, :] for p in layer_params])
    return dict(wqkv=wqkv, wo=wo, w1=w1, w2=w2, vecd=vecd, vech=vech)


def embedding_block(tokens, emb_table, d_model):
    # TODO(synk): the nn.Embedding gather is data-dependent; it stays in plain
    # JAX glue (the arithmetic hot path lives in the fused Pallas kernel).
    out = emb_table[tokens]                              # (B, S, D)
    S = tokens.shape[1]
    p = jnp.arange(S, dtype=jnp.float32)[:, None]
    j = jnp.arange(d_model // 2, dtype=jnp.float32)
    units = 10000.0 ** (2.0 * j / d_model)               # pos_units of the reference
    ang = p / units[None, :]
    pos = jnp.zeros((S, d_model), jnp.float32)
    pos = pos.at[:, 0::2].set(jnp.sin(ang))
    pos = pos.at[:, 1::2].set(jnp.cos(ang))
    return out + pos[None, :, :]


# ---------------------------- pure-JAX reference ----------------------------

def encoder_ref(x, layer_params, num_heads, matmul_dtype=jnp.float32):
    """Unpadded per-batch reference; matmul_dtype mimics the kernel's MXU casts."""
    def mm(a, b):
        return jnp.dot(a.astype(matmul_dtype), b.astype(matmul_dtype),
                       preferred_element_type=jnp.float32)

    out = x
    for p in layer_params:
        D = out.shape[-1]
        dk = D // num_heads
        scale = 1.0 / math.sqrt(D)
        q = mm(out, p["wq"]) + p["bq"]
        k = mm(out, p["wk"]) + p["bk"]
        v = mm(out, p["wv"]) + p["bv"]
        heads = []
        for h in range(num_heads):
            sl = slice(h * dk, (h + 1) * dk)
            s = jnp.einsum("bqd,bkd->bqk",
                           q[..., sl].astype(matmul_dtype),
                           k[..., sl].astype(matmul_dtype),
                           preferred_element_type=jnp.float32) * scale
            pr = jax.nn.softmax(s, axis=1)               # dim=1 -> over queries
            heads.append(jnp.einsum("bqk,bkd->bqd",
                                    pr.astype(matmul_dtype),
                                    v[..., sl].astype(matmul_dtype),
                                    preferred_element_type=jnp.float32))
        cat = jnp.concatenate(heads, axis=-1)
        proj = mm(cat, p["wo"]) + p["bo"]

        def ln(z, w, b):
            mu = z.mean(-1, keepdims=True)
            var = ((z - mu) ** 2).mean(-1, keepdims=True)
            return (z - mu) / jnp.sqrt(var + 1e-5) * w + b

        h1 = ln(proj + out, p["ln1w"], p["ln1b"])
        ff = jnp.maximum(mm(h1, p["w1"]) + p["b1"], 0.0)
        ff = mm(ff, p["w2"]) + p["b2"]
        out = ln(h1 + ff, p["ln2w"], p["ln2b"])
    return out


# ---------------------------------- main ------------------------------------

if __name__ == "__main__":
    num_embeddings = 100
    num_enc_layers = 2
    d_model = 32
    num_heads = 4
    hidden = 64
    B, S = 4, 8

    key = jax.random.PRNGKey(0)
    k_emb, k_tok, *k_layers = jax.random.split(key, 2 + num_enc_layers)

    emb_table = jax.random.normal(k_emb, (num_embeddings, d_model), jnp.float32)
    tokens = jax.random.randint(k_tok, (B, S), 0, num_embeddings)
    layer_params = [init_layer_params(k, d_model, num_heads, hidden) for k in k_layers]
    packed = pack_params(layer_params, d_model, hidden)

    x_emb = embedding_block(tokens, emb_table, d_model)

    out = transformer_encoder_pallas(x_emb, packed, num_heads=num_heads)
    out = jax.block_until_ready(out)

    # Strong check vs a reference that uses the same bf16 matmul casts, plus a
    # loose sanity check vs the pure-f32 semantics of the PyTorch module.
    ref_bf = encoder_ref(x_emb, layer_params, num_heads, matmul_dtype=jnp.bfloat16)
    ref_f32 = encoder_ref(x_emb, layer_params, num_heads, matmul_dtype=jnp.float32)
    ref_bf = jax.block_until_ready(ref_bf)
    ref_f32 = jax.block_until_ready(ref_f32)

    assert out.shape == (B, S, d_model)
    assert jnp.allclose(out, ref_bf, rtol=2e-2, atol=2e-2), \
        "Pallas kernel mismatch vs bf16-matmul JAX reference"
    assert jnp.allclose(out, ref_f32, rtol=1e-1, atol=1e-1), \
        "Pallas kernel mismatch vs f32 JAX reference"
    print("KERNEL_OK")
</pallas_src>

<mosaic_0001>
module attributes {stable_mosaic.version = 11 : i64} {
  func.func @_encoder_kernel(%arg0: i32, %arg1: i32, %arg2: memref<16x128xf32, #tpu.memory_space<vmem>>, %arg3: memref<1x128x384xbf16, #tpu.memory_space<vmem>>, %arg4: memref<1x128x128xbf16, #tpu.memory_space<vmem>>, %arg5: memref<1x128x128xbf16, #tpu.memory_space<vmem>>, %arg6: memref<1x128x128xbf16, #tpu.memory_space<vmem>>, %arg7: memref<1x9x128xf32, #tpu.memory_space<vmem>>, %arg8: memref<1x1x128xf32, #tpu.memory_space<vmem>>, %arg9: memref<16x128xf32, #tpu.memory_space<vmem>>) attributes {dimension_semantics = [#tpu.dimension_semantics<parallel>, #tpu.dimension_semantics<arbitrary>], iteration_bounds = array<i64: 2, 2>, scalar_prefetch = 0 : i64, scratch_operands = 0 : i64, tpu.core_type = #tpu.core_type<tc>, window_params = [{transform_indices = @transform_0, window_bounds = array<i64: 16, 128>}, {transform_indices = @transform_1, window_bounds = array<i64: 1, 128, 384>}, {transform_indices = @transform_2, window_bounds = array<i64: 1, 128, 128>}, {transform_indices = @transform_3, window_bounds = array<i64: 1, 128, 128>}, {transform_indices = @transform_4, window_bounds = array<i64: 1, 128, 128>}, {transform_indices = @transform_5, window_bounds = array<i64: 1, 9, 128>}, {transform_indices = @transform_6, window_bounds = array<i64: 1, 1, 128>}, {transform_indices = @transform_7, window_bounds = array<i64: 16, 128>}]} {
    %c0_i32 = arith.constant 0 : i32
    %0 = arith.cmpi eq, %arg1, %c0_i32 : i32
    %1 = arith.extui %0 : i1 to i32
    %c0_i32_0 = arith.constant 0 : i32
    %2 = arith.cmpi ne, %1, %c0_i32_0 : i32
    scf.if %2 {
      %c0_59 = arith.constant 0 : index
      %c0_60 = arith.constant 0 : index
      %185 = vector.load %arg2[%c0_59, %c0_60] : memref<16x128xf32, #tpu.memory_space<vmem>>, vector<16x128xf32>
      %c0_61 = arith.constant 0 : index
      %c0_62 = arith.constant 0 : index
      %186 = vector.load %arg9[%c0_61, %c0_62] : memref<16x128xf32, #tpu.memory_space<vmem>>, vector<16x128xf32>
      tpu.vector_store %arg9[%c0_61, %c0_62], %185 {strides = array<i32>} : memref<16x128xf32, #tpu.memory_space<vmem>>, vector<16x128xf32>,
    } else {
    }
    %c0 = arith.constant 0 : index
    %c0_1 = arith.constant 0 : index
    %3 = vector.load %arg9[%c0, %c0_1] : memref<16x128xf32, #tpu.memory_space<vmem>>, vector<16x128xf32>
    %4 = arith.truncf %3 : vector<16x128xf32> to vector<16x128xbf16>
    %c0_2 = arith.constant 0 : index
    %c0_3 = arith.constant 0 : index
    %c0_4 = arith.constant 0 : index
    %5 = vector.load %arg7[%c0_2, %c0_3, %c0_4] : memref<1x9x128xf32, #tpu.memory_space<vmem>>, vector<1x9x128xf32>
    %6 = vector.shape_cast %5 : vector<1x9x128xf32> to vector<9x128xf32>
    %7 = vector.extract_strided_slice %6 {offsets = [0, 0], sizes = [1, 128], strides = [1, 1]} : vector<9x128xf32> to vector<1x128xf32>
    %8 = vector.extract_strided_slice %6 {offsets = [1, 0], sizes = [1, 128], strides = [1, 1]} : vector<9x128xf32> to vector<1x128xf32>
    %9 = vector.extract_strided_slice %6 {offsets = [2, 0], sizes = [1, 128], strides = [1, 1]} : vector<9x128xf32> to vector<1x128xf32>
    %10 = vector.extract_strided_slice %6 {offsets = [3, 0], sizes = [1, 128], strides = [1, 1]} : vector<9x128xf32> to vector<1x128xf32>
    %11 = vector.extract_strided_slice %6 {offsets = [4, 0], sizes = [1, 128], strides = [1, 1]} : vector<9x128xf32> to vector<1x128xf32>
    %12 = vector.extract_strided_slice %6 {offsets = [5, 0], sizes = [1, 128], strides = [1, 1]} : vector<9x128xf32> to vector<1x128xf32>
    %13 = vector.extract_strided_slice %6 {offsets = [6, 0], sizes = [1, 128], strides = [1, 1]} : vector<9x128xf32> to vector<1x128xf32>
    %14 = vector.extract_strided_slice %6 {offsets = [7, 0], sizes = [1, 128], strides = [1, 1]} : vector<9x128xf32> to vector<1x128xf32>
    %15 = vector.extract_strided_slice %6 {offsets = [8, 0], sizes = [1, 128], strides = [1, 1]} : vector<9x128xf32> to vector<1x128xf32>
    %c0_5 = arith.constant 0 : index
    %c0_6 = arith.constant 0 : index
    %c0_7 = arith.constant 0 : index
    %16 = vector.load %arg8[%c0_5, %c0_6, %c0_7] : memref<1x1x128xf32, #tpu.memory_space<vmem>>, vector<1x1x128xf32>
    %17 = vector.shape_cast %16 : vector<1x1x128xf32> to vector<1x128xf32>
    %c0_8 = arith.constant 0 : index
    %c0_9 = arith.constant 0 : index
    %c0_10 = arith.constant 0 : index
    %18 = vector.load %arg3[%c0_8, %c0_9, %c0_10] : memref<1x128x384xbf16, #tpu.memory_space<vmem>>, vector<1x128x384xbf16>
    %19 = vector.shape_cast %18 : vector<1x128x384xbf16> to vector<128x384xbf16>
    %cst = arith.constant dense<0.000000e+00> : vector<16x384xf32>
    %20 = tpu.matmul %4, %19, %cst {dimension_numbers = #tpu.dot_dimension_numbers<[1], [0], [0], [1], [0, 0, 1, 1], [], []>} : vector<16x128xbf16>, vector<128x384xbf16>, vector<16x384xf32> -> vector<16x384xf32>
    %21 = vector.extract_strided_slice %20 {offsets = [0, 0], sizes = [16, 128], strides = [1, 1]} : vector<16x384xf32> to vector<16x128xf32>
    %22 = vector.broadcast %7 : vector<1x128xf32> to vector<16x128xf32>
    %23 = arith.addf %21, %22 : vector<16x128xf32>
    %24 = vector.extract_strided_slice %20 {offsets = [0, 128], sizes = [16, 128], strides = [1, 1]} : vector<16x384xf32> to vector<16x128xf32>
    %25 = vector.broadcast %8 : vector<1x128xf32> to vector<16x128xf32>
    %26 = arith.addf %24, %25 : vector<16x128xf32>
    %27 = vector.extract_strided_slice %20 {offsets = [0, 256], sizes = [16, 128], strides = [1, 1]} : vector<16x384xf32> to vector<16x128xf32>
    %28 = vector.broadcast %9 : vector<1x128xf32> to vector<16x128xf32>
    %29 = arith.addf %27, %28 : vector<16x128xf32>
    %30 = arith.truncf %23 : vector<16x128xf32> to vector<16x128xbf16>
    %31 = arith.truncf %26 : vector<16x128xf32> to vector<16x128xbf16>
    %32 = arith.truncf %29 : vector<16x128xf32> to vector<16x128xbf16>
    %33 = vector.shape_cast %30 : vector<16x128xbf16> to vector<2x8x128xbf16>
    %34 = vector.shape_cast %31 : vector<16x128xbf16> to vector<2x8x128xbf16>
    %35 = vector.shape_cast %32 : vector<16x128xbf16> to vector<2x8x128xbf16>
    %36 = vector.extract_strided_slice %33 {offsets = [0, 0, 0], sizes = [2, 8, 8], strides = [1, 1, 1]} : vector<2x8x128xbf16> to vector<2x8x8xbf16>
    %37 = vector.extract_strided_slice %34 {offsets = [0, 0, 0], sizes = [2, 8, 8], strides = [1, 1, 1]} : vector<2x8x128xbf16> to vector<2x8x8xbf16>
    "tpu.trace_start"() <{level = 10 : i32, message = "bqd,bkd->bqk"}> : () -> ()
    %cst_11 = arith.constant dense<0.000000e+00> : vector<2x8x8xf32>
    %38 = tpu.matmul %36, %37, %cst_11 {dimension_numbers = #tpu.dot_dimension_numbers<[2], [2], [1], [1], [0, 0, 0, 1, 1, 1], [0], [0]>} : vector<2x8x8xbf16>, vector<2x8x8xbf16>, vector<2x8x8xf32> -> vector<2x8x8xf32>
    "tpu.trace_stop"() : () -> ()
    %cst_12 = arith.constant 0.176776692 : f32
    %39 = vector.broadcast %cst_12 : f32 to vector<2x8x8xf32>
    %40 = arith.mulf %38, %39 : vector<2x8x8xf32>
    %cst_13 = arith.constant dense<0xFF800000> : vector<2x8xf32>
    %41 = vector.multi_reduction <maximumf>, %40, %cst_13 [1] : vector<2x8x8xf32> to vector<2x8xf32>
    %42 = vector.shape_cast %41 : vector<2x8xf32> to vector<2x1x8xf32>
    %43 = vector.broadcast %42 : vector<2x1x8xf32> to vector<2x8x8xf32>
    %44 = arith.subf %40, %43 : vector<2x8x8xf32>
    %45 = math.exp %44 : vector<2x8x8xf32>
    %cst_14 = arith.constant dense<0.000000e+00> : vector<2x8xf32>
    %46 = vector.multi_reduction <add>, %45, %cst_14 [1] : vector<2x8x8xf32> to vector<2x8xf32>
    %47 = vector.shape_cast %46 : vector<2x8xf32> to vector<2x1x8xf32>
    %48 = tpu.reciprocal %47 {approx = true} : vector<2x1x8xf32> -> vector<2x1x8xf32>
    %49 = vector.broadcast %48 : vector<2x1x8xf32> to vector<2x8x8xf32>
    %50 = arith.mulf %45, %49 : vector<2x8x8xf32>
    %51 = arith.truncf %50 : vector<2x8x8xf32> to vector<2x8x8xbf16>
    %52 = vector.extract_strided_slice %35 {offsets = [0, 0, 0], sizes = [2, 8, 8], strides = [1, 1, 1]} : vector<2x8x128xbf16> to vector<2x8x8xbf16>
    "tpu.trace_start"() <{level = 10 : i32, message = "bqk,bkd->bqd"}> : () -> ()
    %cst_15 = arith.constant dense<0.000000e+00> : vector<2x8x8xf32>
    %53 = tpu.matmul %51, %52, %cst_15 {dimension_numbers = #tpu.dot_dimension_numbers<[2], [1], [1], [2], [0, 0, 0, 1, 1, 2], [0], [0]>} : vector<2x8x8xbf16>, vector<2x8x8xbf16>, vector<2x8x8xf32> -> vector<2x8x8xf32>
    "tpu.trace_stop"() : () -> ()
    %54 = vector.shape_cast %53 : vector<2x8x8xf32> to vector<16x8xf32>
    %55 = vector.extract_strided_slice %33 {offsets = [0, 0, 8], sizes = [2, 8, 8], strides = [1, 1, 1]} : vector<2x8x128xbf16> to vector<2x8x8xbf16>
    %56 = vector.extract_strided_slice %34 {offsets = [0, 0, 8], sizes = [2, 8, 8], strides = [1, 1, 1]} : vector<2x8x128xbf16> to vector<2x8x8xbf16>
    "tpu.trace_start"() <{level = 10 : i32, message = "bqd,bkd->bqk"}> : () -> ()
    %cst_16 = arith.constant dense<0.000000e+00> : vector<2x8x8xf32>
    %57 = tpu.matmul %55, %56, %cst_16 {dimension_numbers = #tpu.dot_dimension_numbers<[2], [2], [1], [1], [0, 0, 0, 1, 1, 1], [0], [0]>} : vector<2x8x8xbf16>, vector<2x8x8xbf16>, vector<2x8x8xf32> -> vector<2x8x8xf32>
    "tpu.trace_stop"() : () -> ()
    %cst_17 = arith.constant 0.176776692 : f32
    %58 = vector.broadcast %cst_17 : f32 to vector<2x8x8xf32>
    %59 = arith.mulf %57, %58 : vector<2x8x8xf32>
    %cst_18 = arith.constant dense<0xFF800000> : vector<2x8xf32>
    %60 = vector.multi_reduction <maximumf>, %59, %cst_18 [1] : vector<2x8x8xf32> to vector<2x8xf32>
    %61 = vector.shape_cast %60 : vector<2x8xf32> to vector<2x1x8xf32>
    %62 = vector.broadcast %61 : vector<2x1x8xf32> to vector<2x8x8xf32>
    %63 = arith.subf %59, %62 : vector<2x8x8xf32>
    %64 = math.exp %63 : vector<2x8x8xf32>
    %cst_19 = arith.constant dense<0.000000e+00> : vector<2x8xf32>
    %65 = vector.multi_reduction <add>, %64, %cst_19 [1] : vector<2x8x8xf32> to vector<2x8xf32>
    %66 = vector.shape_cast %65 : vector<2x8xf32> to vector<2x1x8xf32>
    %67 = tpu.reciprocal %66 {approx = true} : vector<2x1x8xf32> -> vector<2x1x8xf32>
    %68 = vector.broadcast %67 : vector<2x1x8xf32> to vector<2x8x8xf32>
    %69 = arith.mulf %64, %68 : vector<2x8x8xf32>
    %70 = arith.truncf %69 : vector<2x8x8xf32> to vector<2x8x8xbf16>
    %71 = vector.extract_strided_slice %35 {offsets = [0, 0, 8], sizes = [2, 8, 8], strides = [1, 1, 1]} : vector<2x8x128xbf16> to vector<2x8x8xbf16>
    "tpu.trace_start"() <{level = 10 : i32, message = "bqk,bkd->bqd"}> : () -> ()
    %cst_20 = arith.constant dense<0.000000e+00> : vector<2x8x8xf32>
    %72 = tpu.matmul %70, %71, %cst_20 {dimension_numbers = #tpu.dot_dimension_numbers<[2], [1], [1], [2], [0, 0, 0, 1, 1, 2], [0], [0]>} : vector<2x8x8xbf16>, vector<2x8x8xbf16>, vector<2x8x8xf32> -> vector<2x8x8xf32>
    "tpu.trace_stop"() : () -> ()
    %73 = vector.shape_cast %72 : vector<2x8x8xf32> to vector<16x8xf32>
    %74 = vector.extract_strided_slice %33 {offsets = [0, 0, 16], sizes = [2, 8, 8], strides = [1, 1, 1]} : vector<2x8x128xbf16> to vector<2x8x8xbf16>
    %75 = vector.extract_strided_slice %34 {offsets = [0, 0, 16], sizes = [2, 8, 8], strides = [1, 1, 1]} : vector<2x8x128xbf16> to vector<2x8x8xbf16>
    "tpu.trace_start"() <{level = 10 : i32, message = "bqd,bkd->bqk"}> : () -> ()
    %cst_21 = arith.constant dense<0.000000e+00> : vector<2x8x8xf32>
    %76 = tpu.matmul %74, %75, %cst_21 {dimension_numbers = #tpu.dot_dimension_numbers<[2], [2], [1], [1], [0, 0, 0, 1, 1, 1], [0], [0]>} : vector<2x8x8xbf16>, vector<2x8x8xbf16>, vector<2x8x8xf32> -> vector<2x8x8xf32>
    "tpu.trace_stop"() : () -> ()
    %cst_22 = arith.constant 0.176776692 : f32
    %77 = vector.broadcast %cst_22 : f32 to vector<2x8x8xf32>
    %78 = arith.mulf %76, %77 : vector<2x8x8xf32>
    %cst_23 = arith.constant dense<0xFF800000> : vector<2x8xf32>
    %79 = vector.multi_reduction <maximumf>, %78, %cst_23 [1] : vector<2x8x8xf32> to vector<2x8xf32>
    %80 = vector.shape_cast %79 : vector<2x8xf32> to vector<2x1x8xf32>
    %81 = vector.broadcast %80 : vector<2x1x8xf32> to vector<2x8x8xf32>
    %82 = arith.subf %78, %81 : vector<2x8x8xf32>
    %83 = math.exp %82 : vector<2x8x8xf32>
    %cst_24 = arith.constant dense<0.000000e+00> : vector<2x8xf32>
    %84 = vector.multi_reduction <add>, %83, %cst_24 [1] : vector<2x8x8xf32> to vector<2x8xf32>
    %85 = vector.shape_cast %84 : vector<2x8xf32> to vector<2x1x8xf32>
    %86 = tpu.reciprocal %85 {approx = true} : vector<2x1x8xf32> -> vector<2x1x8xf32>
    %87 = vector.broadcast %86 : vector<2x1x8xf32> to vector<2x8x8xf32>
    %88 = arith.mulf %83, %87 : vector<2x8x8xf32>
    %89 = arith.truncf %88 : vector<2x8x8xf32> to vector<2x8x8xbf16>
    %90 = vector.extract_strided_slice %35 {offsets = [0, 0, 16], sizes = [2, 8, 8], strides = [1, 1, 1]} : vector<2x8x128xbf16> to vector<2x8x8xbf16>
    "tpu.trace_start"() <{level = 10 : i32, message = "bqk,bkd->bqd"}> : () -> ()
    %cst_25 = arith.constant dense<0.000000e+00> : vector<2x8x8xf32>
    %91 = tpu.matmul %89, %90, %cst_25 {dimension_numbers = #tpu.dot_dimension_numbers<[2], [1], [1], [2], [0, 0, 0, 1, 1, 2], [0], [0]>} : vector<2x8x8xbf16>, vector<2x8x8xbf16>, vector<2x8x8xf32> -> vector<2x8x8xf32>
    "tpu.trace_stop"() : () -> ()
    %92 = vector.shape_cast %91 : vector<2x8x8xf32> to vector<16x8xf32>
    %93 = vector.extract_strided_slice %33 {offsets = [0, 0, 24], sizes = [2, 8, 8], strides = [1, 1, 1]} : vector<2x8x128xbf16> to vector<2x8x8xbf16>
    %94 = vector.extract_strided_slice %34 {offsets = [0, 0, 24], sizes = [2, 8, 8], strides = [1, 1, 1]} : vector<2x8x128xbf16> to vector<2x8x8xbf16>
    "tpu.trace_start"() <{level = 10 : i32, message = "bqd,bkd->bqk"}> : () -> ()
    %cst_26 = arith.constant dense<0.000000e+00> : vector<2x8x8xf32>
    %95 = tpu.matmul %93, %94, %cst_26 {dimension_numbers = #tpu.dot_dimension_numbers<[2], [2], [1], [1], [0, 0, 0, 1, 1, 1], [0], [0]>} : vector<2x8x8xbf16>, vector<2x8x8xbf16>, vector<2x8x8xf32> -> vector<2x8x8xf32>
    "tpu.trace_stop"() : () -> ()
    %cst_27 = arith.constant 0.176776692 : f32
    %96 = vector.broadcast %cst_27 : f32 to vector<2x8x8xf32>
    %97 = arith.mulf %95, %96 : vector<2x8x8xf32>
    %cst_28 = arith.constant dense<0xFF800000> : vector<2x8xf32>
    %98 = vector.multi_reduction <maximumf>, %97, %cst_28 [1] : vector<2x8x8xf32> to vector<2x8xf32>
    %99 = vector.shape_cast %98 : vector<2x8xf32> to vector<2x1x8xf32>
    %100 = vector.broadcast %99 : vector<2x1x8xf32> to vector<2x8x8xf32>
    %101 = arith.subf %97, %100 : vector<2x8x8xf32>
    %102 = math.exp %101 : vector<2x8x8xf32>
    %cst_29 = arith.constant dense<0.000000e+00> : vector<2x8xf32>
    %103 = vector.multi_reduction <add>, %102, %cst_29 [1] : vector<2x8x8xf32> to vector<2x8xf32>
    %104 = vector.shape_cast %103 : vector<2x8xf32> to vector<2x1x8xf32>
    %105 = tpu.reciprocal %104 {approx = true} : vector<2x1x8xf32> -> vector<2x1x8xf32>
    %106 = vector.broadcast %105 : vector<2x1x8xf32> to vector<2x8x8xf32>
    %107 = arith.mulf %102, %106 : vector<2x8x8xf32>
    %108 = arith.truncf %107 : vector<2x8x8xf32> to vector<2x8x8xbf16>
    %109 = vector.extract_strided_slice %35 {offsets = [0, 0, 24], sizes = [2, 8, 8], strides = [1, 1, 1]} : vector<2x8x128xbf16> to vector<2x8x8xbf16>
    "tpu.trace_start"() <{level = 10 : i32, message = "bqk,bkd->bqd"}> : () -> ()
    %cst_30 = arith.constant dense<0.000000e+00> : vector<2x8x8xf32>
    %110 = tpu.matmul %108, %109, %cst_30 {dimension_numbers = #tpu.dot_dimension_numbers<[2], [1], [1], [2], [0, 0, 0, 1, 1, 2], [0], [0]>} : vector<2x8x8xbf16>, vector<2x8x8xbf16>, vector<2x8x8xf32> -> vector<2x8x8xf32>
    "tpu.trace_stop"() : () -> ()
    %111 = vector.shape_cast %110 : vector<2x8x8xf32> to vector<16x8xf32>
    %cst_31 = arith.constant 0.000000e+00 : f32
    %112 = vector.broadcast %cst_31 : f32 to vector<16x96xf32>
    %113 = tpu.concatenate %54, %73, %92, %111, %112 in 1 : vector<16x8xf32>, vector<16x8xf32>, vector<16x8xf32>, vector<16x8xf32>, vector<16x96xf32> -> vector<16x128xf32>
    %114 = arith.truncf %113 : vector<16x128xf32> to vector<16x128xbf16>
    %c0_32 = arith.constant 0 : index
    %c0_33 = arith.constant 0 : index
    %c0_34 = arith.constant 0 : index
    %115 = vector.load %arg4[%c0_32, %c0_33, %c0_34] : memref<1x128x128xbf16, #tpu.memory_space<vmem>>, vector<1x128x128xbf16>
    %116 = vector.shape_cast %115 : vector<1x128x128xbf16> to vector<128x128xbf16>
    %cst_35 = arith.constant dense<0.000000e+00> : vector<16x128xf32>
    %117 = tpu.matmul %114, %116, %cst_35 {dimension_numbers = #tpu.dot_dimension_numbers<[1], [0], [0], [1], [0, 0, 1, 1], [], []>} : vector<16x128xbf16>, vector<128x128xbf16>, vector<16x128xf32> -> vector<16x128xf32>
    %118 = vector.broadcast %10 : vector<1x128xf32> to vector<16x128xf32>
    %119 = arith.addf %117, %118 : vector<16x128xf32>
    %120 = arith.addf %119, %3 : vector<16x128xf32>
    %cst_36 = arith.constant dense<0.000000e+00> : vector<16xf32>
    %121 = vector.multi_reduction <add>, %120, %cst_36 [1] : vector<16x128xf32> to vector<16xf32>
    %122 = vector.shape_cast %121 : vector<16xf32> to vector<16x1xf32>
    %123 = arith.mulf %120, %120 : vector<16x128xf32>
    %cst_37 = arith.constant dense<0.000000e+00> : vector<16xf32>
    %124 = vector.multi_reduction <add>, %123, %cst_37 [1] : vector<16x128xf32> to vector<16xf32>
    %125 = vector.shape_cast %124 : vector<16xf32> to vector<16x1xf32>
    %cst_38 = arith.constant 3.200000e+01 : f32
    %126 = vector.broadcast %cst_38 : f32 to vector<16x1xf32>
    %127 = arith.divf %122, %126 : vector<16x1xf32>
    %cst_39 = arith.constant 3.200000e+01 : f32
    %128 = vector.broadcast %cst_39 : f32 to vector<16x1xf32>
    %129 = arith.divf %125, %128 : vector<16x1xf32>
    %130 = arith.mulf %127, %127 : vector<16x1xf32>
    %131 = arith.subf %129, %130 : vector<16x1xf32>
    %cst_40 = arith.constant 0.000000e+00 : f32
    %132 = vector.broadcast %cst_40 : f32 to vector<16x1xf32>
    %133 = arith.maximumf %131, %132 : vector<16x1xf32>
    %134 = vector.broadcast %127 : vector<16x1xf32> to vector<16x128xf32>
    %135 = arith.subf %120, %134 : vector<16x128xf32>
    %cst_41 = arith.constant 9.99999974E-6 : f32
    %136 = vector.broadcast %cst_41 : f32 to vector<16x1xf32>
    %137 = arith.addf %133, %136 : vector<16x1xf32>
    %138 = math.rsqrt %137 : vector<16x1xf32>
    %139 = vector.broadcast %138 : vector<16x1xf32> to vector<16x128xf32>
    %140 = arith.mulf %135, %139 : vector<16x128xf32>
    %141 = vector.broadcast %12 : vector<1x128xf32> to vector<16x128xf32>
    %142 = arith.mulf %140, %141 : vector<16x128xf32>
    %143 = vector.broadcast %13 : vector<1x128xf32> to vector<16x128xf32>
    %144 = arith.addf %142, %143 : vector<16x128xf32>
    %145 = arith.truncf %144 : vector<16x128xf32> to vector<16x128xbf16>
    %c0_42 = arith.constant 0 : index
    %c0_43 = arith.constant 0 : index
    %c0_44 = arith.constant 0 : index
    %146 = vector.load %arg5[%c0_42, %c0_43, %c0_44] : memref<1x128x128xbf16, #tpu.memory_space<vmem>>, vector<1x128x128xbf16>
    %147 = vector.shape_cast %146 : vector<1x128x128xbf16> to vector<128x128xbf16>
    %cst_45 = arith.constant dense<0.000000e+00> : vector<16x128xf32>
    %148 = tpu.matmul %145, %147, %cst_45 {dimension_numbers = #tpu.dot_dimension_numbers<[1], [0], [0], [1], [0, 0, 1, 1], [], []>} : vector<16x128xbf16>, vector<128x128xbf16>, vector<16x128xf32> -> vector<16x128xf32>
    %149 = vector.broadcast %17 : vector<1x128xf32> to vector<16x128xf32>
    %150 = arith.addf %148, %149 : vector<16x128xf32>
    %cst_46 = arith.constant 0.000000e+00 : f32
    %151 = vector.broadcast %cst_46 : f32 to vector<16x128xf32>
    %152 = arith.maximumf %150, %151 : vector<16x128xf32>
    %153 = arith.truncf %152 : vector<16x128xf32> to vector<16x128xbf16>
    %c0_47 = arith.constant 0 : index
    %c0_48 = arith.constant 0 : index
    %c0_49 = arith.constant 0 : index
    %154 = vector.load %arg6[%c0_47, %c0_48, %c0_49] : memref<1x128x128xbf16, #tpu.memory_space<vmem>>, vector<1x128x128xbf16>
    %155 = vector.shape_cast %154 : vector<1x128x128xbf16> to vector<128x128xbf16>
    %cst_50 = arith.constant dense<0.000000e+00> : vector<16x128xf32>
    %156 = tpu.matmul %153, %155, %cst_50 {dimension_numbers = #tpu.dot_dimension_numbers<[1], [0], [0], [1], [0, 0, 1, 1], [], []>} : vector<16x128xbf16>, vector<128x128xbf16>, vector<16x128xf32> -> vector<16x128xf32>
    %157 = vector.broadcast %11 : vector<1x128xf32> to vector<16x128xf32>
    %158 = arith.addf %156, %157 : vector<16x128xf32>
    %159 = arith.addf %144, %158 : vector<16x128xf32>
    %cst_51 = arith.constant dense<0.000000e+00> : vector<16xf32>
    %160 = vector.multi_reduction <add>, %159, %cst_51 [1] : vector<16x128xf32> to vector<16xf32>
    %161 = vector.shape_cast %160 : vector<16xf32> to vector<16x1xf32>
    %162 = arith.mulf %159, %159 : vector<16x128xf32>
    %cst_52 = arith.constant dense<0.000000e+00> : vector<16xf32>
    %163 = vector.multi_reduction <add>, %162, %cst_52 [1] : vector<16x128xf32> to vector<16xf32>
    %164 = vector.shape_cast %163 : vector<16xf32> to vector<16x1xf32>
    %cst_53 = arith.constant 3.200000e+01 : f32
    %165 = vector.broadcast %cst_53 : f32 to vector<16x1xf32>
    %166 = arith.divf %161, %165 : vector<16x1xf32>
    %cst_54 = arith.constant 3.200000e+01 : f32
    %167 = vector.broadcast %cst_54 : f32 to vector<16x1xf32>
    %168 = arith.divf %164, %167 : vector<16x1xf32>
    %169 = arith.mulf %166, %166 : vector<16x1xf32>
    %170 = arith.subf %168, %169 : vector<16x1xf32>
    %cst_55 = arith.constant 0.000000e+00 : f32
    %171 = vector.broadcast %cst_55 : f32 to vector<16x1xf32>
    %172 = arith.maximumf %170, %171 : vector<16x1xf32>
    %173 = vector.broadcast %166 : vector<16x1xf32> to vector<16x128xf32>
    %174 = arith.subf %159, %173 : vector<16x128xf32>
    %cst_56 = arith.constant 9.99999974E-6 : f32
    %175 = vector.broadcast %cst_56 : f32 to vector<16x1xf32>
    %176 = arith.addf %172, %175 : vector<16x1xf32>
    %177 = math.rsqrt %176 : vector<16x1xf32>
    %178 = vector.broadcast %177 : vector<16x1xf32> to vector<16x128xf32>
    %179 = arith.mulf %174, %178 : vector<16x128xf32>
    %180 = vector.broadcast %14 : vector<1x128xf32> to vector<16x128xf32>
    %181 = arith.mulf %179, %180 : vector<16x128xf32>
    %182 = vector.broadcast %15 : vector<1x128xf32> to vector<16x128xf32>
    %183 = arith.addf %181, %182 : vector<16x128xf32>
    %c0_57 = arith.constant 0 : index
    %c0_58 = arith.constant 0 : index
    %184 = vector.load %arg9[%c0_57, %c0_58] : memref<16x128xf32, #tpu.memory_space<vmem>>, vector<16x128xf32>
    tpu.vector_store %arg9[%c0_57, %c0_58], %183 {strides = array<i32>} : memref<16x128xf32, #tpu.memory_space<vmem>>, vector<16x128xf32>,
    return
  }
  func.func @transform_0(%arg0: i32, %arg1: i32) -> (i32, i32) {
    %c0_i32 = arith.constant 0 : i32
    %c0_i32_0 = arith.constant 0 : i32
    return %arg0, %c0_i32 : i32, i32
  }
  func.func @transform_1(%arg0: i32, %arg1: i32) -> (i32, i32, i32) {
    %c0_i32 = arith.constant 0 : i32
    %c0_i32_0 = arith.constant 0 : i32
    %c0_i32_1 = arith.constant 0 : i32
    return %arg1, %c0_i32, %c0_i32_0 : i32, i32, i32
  }
  func.func @transform_2(%arg0: i32, %arg1: i32) -> (i32, i32, i32) {
    %c0_i32 = arith.constant 0 : i32
    %c0_i32_0 = arith.constant 0 : i32
    %c0_i32_1 = arith.constant 0 : i32
    return %arg1, %c0_i32, %c0_i32_0 : i32, i32, i32
  }
  func.func @transform_3(%arg0: i32, %arg1: i32) -> (i32, i32, i32) {
    %c0_i32 = arith.constant 0 : i32
    %c0_i32_0 = arith.constant 0 : i32
    %c0_i32_1 = arith.constant 0 : i32
    return %arg1, %c0_i32, %c0_i32_0 : i32, i32, i32
  }
  func.func @transform_4(%arg0: i32, %arg1: i32) -> (i32, i32, i32) {
    %c0_i32 = arith.constant 0 : i32
    %c0_i32_0 = arith.constant 0 : i32
    %c0_i32_1 = arith.constant 0 : i32
    return %arg1, %c0_i32, %c0_i32_0 : i32, i32, i32
  }
  func.func @transform_5(%arg0: i32, %arg1: i32) -> (i32, i32, i32) {
    %c0_i32 = arith.constant 0 : i32
    %c0_i32_0 = arith.constant 0 : i32
    %c0_i32_1 = arith.constant 0 : i32
    return %arg1, %c0_i32, %c0_i32_0 : i32, i32, i32
  }
  func.func @transform_6(%arg0: i32, %arg1: i32) -> (i32, i32, i32) {
    %c0_i32 = arith.constant 0 : i32
    %c0_i32_0 = arith.constant 0 : i32
    %c0_i32_1 = arith.constant 0 : i32
    return %arg1, %c0_i32, %c0_i32_0 : i32, i32, i32
  }
  func.func @transform_7(%arg0: i32, %arg1: i32) -> (i32, i32) {
    %c0_i32 = arith.constant 0 : i32
    %c0_i32_0 = arith.constant 0 : i32
    return %arg0, %c0_i32 : i32, i32
  }
}

</mosaic_0001>

<bundles_post_ra>
// kernel: tpu_custom_call.1
= control target key start
LH: loop header
LB: loop body
LE: loop exit
PB: predicated region body
PF: predicated region fallthrough
CT: control target
= control target key end

     0   :  { %s3841_s0 = inlined_call_operand.vmem [shape: f32[32,128], index: 0, kind: input, shape index: {}]   ;;  %s3842_s1 = inlined_call_operand.hbm [shape: bf16[2,128,384], index: 1, kind: input, shape index: {}]   ;;  %s3843_s2 = inlined_call_operand.hbm [shape: bf16[2,128,128], index: 2, kind: input, shape index: {}]   ;;  %s3844_s3 = inlined_call_operand.hbm [shape: bf16[2,128,128], index: 3, kind: input, shape index: {}]   ;;  %s3845_s4 = inlined_call_operand.hbm [shape: bf16[2,128,128], index: 4, kind: input, shape index: {}]   ;;  %s3846_s5 = inlined_call_operand.vmem [shape: f32[2,9,128], index: 5, kind: input, shape index: {}]   ;;  %s3847_s6 = inlined_call_operand.vmem [shape: f32[2,1,128], index: 6, kind: input, shape index: {}]   ;;  %s3848_s7 = inlined_call_operand.hbm [shape: f32[32,128], index: 7, kind: output, shape index: {}]  }
   0x1   :  { %3863 = sst [smem:[#allocation25_spill]] %s3842_s1 }
   0x2   :  { %3864 = sst [smem:[#allocation26_spill]] %s3843_s2 }
   0x3   :  { %3865 = sst [smem:[#allocation27_spill]] %s3846_s5 }
   0x4   :  { %3866 = sst [smem:[#allocation28_spill]] %s3847_s6 }
   0x5   :  { %3867 = sst [smem:[#allocation29_spill]] %s3848_s7 }
   0x6   :  { %12 = vsyncpa [#allocation3], 0 }
   0x7   :  { %14 = vsyncpa [#allocation3 + $0x1], 0 }
   0x8   :  { %15 = vsyncpa [#allocation6], 0 }
   0x9   :  { %17 = vsyncpa [#allocation6 + $0x1], 0 }
   0xa   :  { %18 = vsyncpa [#allocation9], 0 }
   0xb   :  { %20 = vsyncpa [#allocation9 + $0x1], 0 }
   0xc   :  { %21 = vsyncpa [#allocation4], 0 }
   0xd   :  { %23 = vsyncpa [#allocation4 + $0x1], 0  ;;  %s3279_s24 = smov 0   ;;  %s3281_s25 = smov 0  }
   0xe   :  { %s3283_s26 = smov 0   ;;  %s3285_s27 = smov 0  }
   0xf   :  { %s3287_s28 = smov 0   ;;  %s3289_s29 = smov 0  }
  0x10   :  { %s3291_s30 = smov 0   ;;  %s3293_s8 = smov 0  }
  0x11   :  { %s3295_s9 = smov 0   ;;  %s3297_s10 = smov 0  }
  0x12   :  { %s3299_s11 = smov 0  }
  0x13 LB: > { %3868 = sst [smem:[#allocation15_spill]] %s3178_s24  ;;  %s3333_s12 = sadd.s32 4294967295, %s3218_s11   ;;  %s3218_s11 = sphi %s3299_s11, %s29_s11   ;;  %s3214_s10 = sphi %s3297_s10, %s3902_s10   ;;  %s3210_s9 = sphi %s3295_s9, %s3908_s9   ;;  %s3206_s8 = sphi %s3293_s8, %s3900_s8   ;;  %s3202_s30 = sphi %s3291_s30, %s3907_s30   ;;  %s3198_s29 = sphi %s3289_s29, %s3899_s29   ;;  %s3194_s28 = sphi %s3287_s28, %s3906_s28   ;;  %s3190_s27 = sphi %s3285_s27, %s3905_s27   ;;  %s3186_s26 = sphi %s3283_s26, %s3897_s26   ;;  %s3182_s25 = sphi %s3281_s25, %s3904_s25   ;;  %s3178_s24 = sphi %s3279_s24, %s3903_s24  }
  0x14   : > { %3869 = sst [smem:[#allocation16_spill]] %s3186_s26  ;;  %s2374_s13 = sadd.s32 4294967294, %s3218_s11  }
  0x15   : > { %3870 = sst [smem:[#allocation17_spill]] %s3198_s29  ;;  %s38_s14 = sadd.s32 1, %s3210_s9 }
  0x16   : > { %3871 = sst [smem:[#allocation18_spill]] %s3214_s10  ;;  %s41_s15 = sadd.s32 1, %s3214_s10 }
  0x17   : > { %p39_p0 = scmp.ge.s32.totalorder %s38_s14, 2  ;;  %s74_s16 = sadd.s32 1, %s3198_s29 }
  0x18   : > { %p81_p1 = scmp.ne.s32.totalorder %s3198_s29, %s3194_s28  ;;  %p82_p2 = scmp.eq.s32.totalorder %s3218_s11, 0 }
  0x19   : > { %s3910_s14 = smov (%p39_p0, %s38_s14), 0  ;;  %s3912_s15 = smov (!%p39_p0, %s41_s15), %s3214_s10 }
  0x1a   : > { %3872 = sst [smem:[#allocation19_spill]] %s3910_s14  ;;  %s71_s17 = ssub.s32 %s3210_s9, %s3910_s14 }
  0x1b   : > { %p3347_p3 = por %p82_p2, %p81_p1  ;;  %p43_p4 = scmp.ge.s32.totalorder %s3912_s15, 2 }
  0x1c   : > { %p72_p5 = scmp.eq.s32.totalorder %s71_s17, 0  ;;  %p87_p6 = scmp.ne.s32.totalorder %s3194_s28, %s3190_s27 }
  0x1d   : > { %p88_p7 = scmp.eq.s32.totalorder %s3333_s12, 0  ;;  %s3914_s15 = smov (%p43_p4, %s3912_s15), 0 }
  0x1e   : > { %3874 = sst [smem:[#allocation20_spill]] %s3914_s15  ;;  %s227_s21 = ssub.s32 %s3214_s10, %s3914_s15 }
  0x1f   : > { %s3356_s19 = scalar_select %p72_p5, %s3198_s29, %s74_s16  }
  0x20   : > { %p3358_p8 = por %p88_p7, %p87_p6  ;;  %p228_p9 = scmp.eq.s32.totalorder %s227_s21, 0 }
  0x21   : > { %3875 = sst [smem:[#allocation21_spill]] %s3356_s19  ;;  %s230_s22 = sadd.s32 1, %s3186_s26 }
  0x22   : > { %p240_p10 = scmp.ne.s32.totalorder %s3186_s26, %s3182_s25  ;;  %p241_p11 = scmp.eq.s32.totalorder %s3333_s12, 3 }
  0x23   : > { %s3369_s23 = scalar_select %p228_p9, %s3186_s26, %s230_s22  }
  0x24   : > { %p3371_p12 = por %p241_p11, %p240_p10  ;;  %p246_p13 = scmp.ne.s32.totalorder %s3182_s25, %s3178_s24 }
  0x25   : > { %3877 = sst [smem:[#allocation22_spill]] %s3369_s23  ;;  %p247_p0 = scmp.eq.s32.totalorder %s2374_s13, 3 }
  0x26   : > { %s3878_s27 = scalar_select %p3371_p12, 1, 0 }
  0x27   : > { %p2762_p1 = scmp.lt.s32.totalorder %s3218_s11, 4  ;;  %s3379_s16 = sand.u32 1, %s3198_s29  }
  0x28   : > { %3879 = sst [smem:[#allocation23_spill]] %s3878_s27  ;;  %p3381_p2 = por %p247_p0, %p246_p13 }
  0x29   : > { %s297_s21 = sand.u32 1, %s3218_s11   ;;  %p3388_p4 = pnand %p2762_p1, %p3347_p3 }
  0x2a   : > { %s3880_s17 = scalar_select %p3381_p2, 1, 0 }
  0x2b   : > { %s3393_s22 = sshll.u32 %s3379_s16, 6  ;;  %s3396_s13 = sshll.u32 %s3210_s9, 10 }
  0x2c   : > { %3881 = sst [smem:[#allocation24_spill]] %s3880_s17  ;;  %s301_s29 = scalar_lea.vmem [#allocation5], %s3393_s22 }
  0x2d   : > { %s3883_s2 = sld [smem:[#allocation26_spill]]  ;;  %s308_s23 = sshll.u32 %s301_s29, 4  ;;  %s309_s23 = int_to_ptr.vmem [resolvable:$true] %s308_s23 }
  0x2e   : > { %p2387_p5 = scmp.ge.s32.totalorder %s3218_s11, 1  ;;  %s3404_s18 = scalar_lea.sflag [#allocation6], %s297_s21 }
  0x2f   : > { %p2980_p3 = pneg %p3388_p4  ;;  %s2991_s26 = scalar_lea.vmem %s309_s23, 1024 }
  0x30   : > { %p2992_p6 = scmp.ne.s32.totalorder %s309_s23, %s2991_s26  ;;  %s3220_s17 = smov [#allocation5]  }
  0x31   : > { %s2996_s24 = sshll.u32 %s3220_s17, 4  ;;  %s2997_s24 = int_to_ptr.vmem [resolvable:$false] %s2996_s24 }
  0x32   : > { %p2994_p7 = pnand %p2992_p6, %p2980_p3  ;;  %s2998_s7 = scalar_lea.vmem %s2997_s24, 2048 }
  0x33   : > { %s307_s19 = scalar_lea.hbm %s3883_s2, %s3396_s13  ;;  %p2999_p10 = scmp.lt.s32.totalorder %s309_s23, %s2997_s24 }
  0x34   : > { %p2995_p9 = pneg %p2994_p7  ;;  %p3000_p11 = scmp.lt.s32.totalorder %s2998_s7, %s2991_s26 }
  0x36   : > { %p3001_p13 = por %p3000_p11, %p2999_p10 }
  0x38   : > { %p3002_p0 = pnand %p3001_p13, %p2995_p9 }
  0x3a   : > { %3005 = shalt.err (!%p3002_p0)
}
  0x3b   : > { %s3859_s29 = smov 64   ;;  %s3861_s10 = smov 4  }
  0x3c   : > { %2751 = dma.hbm_to_vmem [thread:$0]  (!%p3388_p4), %s307_s19, 1024, %s309_s23, %s3404_s18, %s3859_s29, %s3859_s29, %s3861_s10  }
  0x3d   : > { %p372_p1 = scmp.lt.s32.totalorder %s3218_s11, 5  ;;  %s2732_s24 = smul.u32 192, %s3379_s16 }
  0x3e   : > { %s2733_s26 = smul.u32 3072, %s3210_s9  ;;  %s3885_s1 = sld [smem:[#allocation25_spill]] }
  0x3f   : > { %p3420_p6 = pnand %p2387_p5, %p372_p1  ;;  %s280_s2 = scalar_lea.vmem [#allocation2], %s2732_s24 }
  0x40   : > { %s287_s27 = sshll.u32 %s280_s2, 4  ;;  %s277_s6 = scalar_lea.sflag [#allocation3], %s3379_s16  ;;  %s288_s27 = int_to_ptr.vmem [resolvable:$true] %s287_s27 }
  0x41   : > { %s3019_s5 = scalar_lea.vmem %s288_s27, 3072  ;;  %s3223_s19 = smov [#allocation2]  }
  0x42   : > { %p3020_p7 = scmp.ne.s32.totalorder %s288_s27, %s3019_s5  ;;  %s3024_s23 = sshll.u32 %s3223_s19, 4  ;;  %s3025_s23 = int_to_ptr.vmem [resolvable:$false] %s3024_s23 }
  0x43   : > { %s3026_s29 = scalar_lea.vmem %s3025_s23, 6144  ;;  %p3027_p5 = scmp.lt.s32.totalorder %s288_s27, %s3025_s23 }
  0x44   : > { %s286_s21 = scalar_lea.hbm %s3885_s1, %s2733_s26  ;;  %p3022_p9 = pnand %p3020_p7, %p2980_p3 }
  0x45   : > { %p3028_p11 = scmp.lt.s32.totalorder %s3026_s29, %s3019_s5 }
  0x46   : > { %p3023_p10 = pneg %p3022_p9 }
  0x47   : > { %p3029_p13 = por %p3028_p11, %p3027_p5 }
  0x49   : > { %p3030_p0 = pnand %p3029_p13, %p3023_p10 }
  0x4b   : > { %3033 = shalt.err (!%p3030_p0)
}
  0x4c   : > { %s3224_s26 = smov 192   ;;  %s3225_s2 = smov 12  }
  0x4d   : > { %2748 = dma.hbm_to_vmem [thread:$0]  (!%p3388_p4), %s286_s21, 3072, %s288_s27, %s277_s6, %s3224_s26, %s3224_s26, %s3225_s2  }
  0x4e   : > { %s328_s17 = scalar_lea.hbm %s3844_s3, %s3396_s13  ;;  %s322_s19 = scalar_lea.vmem [#allocation7], %s3393_s22 }
  0x4f   : > { %s329_s10 = sshll.u32 %s322_s19, 4  ;;  %s3226_s5 = smov [#allocation7]   ;;  %s330_s10 = int_to_ptr.vmem [resolvable:$true] %s329_s10 }
  0x50   : > { %s3047_s23 = scalar_lea.vmem %s330_s10, 1024  ;;  %s3052_s29 = sshll.u32 %s3226_s5, 4  ;;  %s3053_s29 = int_to_ptr.vmem [resolvable:$false] %s3052_s29 }
  0x51   : > { %p3048_p1 = scmp.ne.s32.totalorder %s330_s10, %s3047_s23  ;;  %s3054_s1 = scalar_lea.vmem %s3053_s29, 2048 }
  0x52   : > { %p3055_p10 = scmp.lt.s32.totalorder %s330_s10, %s3053_s29  ;;  %p3056_p5 = scmp.lt.s32.totalorder %s3054_s1, %s3047_s23 }
  0x53   : > { %p3050_p7 = pnand %p3048_p1, %p2980_p3 }
  0x54   : > { %p3057_p11 = por %p3056_p5, %p3055_p10 }
  0x55   : > { %p3051_p9 = pneg %p3050_p7 }
  0x57   : > { %p3058_p13 = pnand %p3057_p11, %p3051_p9 }
  0x59   : > { %3061 = shalt.err (!%p3058_p13)
}
  0x5a   : > { %s3886_s6 = smov 4   ;;  %s3887_s27 = smov 64  }
  0x5b   : > { %2754 = dma.hbm_to_vmem [thread:$0]  (!%p3388_p4), %s328_s17, 1024, %s330_s10, %s3404_s18, %s3887_s27, %s3887_s27, %s3886_s6  }
  0x5c   : > { %s349_s2 = scalar_lea.hbm %s3845_s4, %s3396_s13  ;;  %s343_s24 = scalar_lea.vmem [#allocation8], %s3393_s22 }
  0x5d   : > { %s350_s1 = sshll.u32 %s343_s24, 4  ;;  %s340_s14 = scalar_lea.sflag [#allocation9], %s3379_s16  ;;  %s351_s1 = int_to_ptr.vmem [resolvable:$true] %s350_s1 }
  0x5e   : > { %s3075_s19 = scalar_lea.vmem %s351_s1, 1024  ;;  %s3227_s23 = smov [#allocation8]  }
  0x5f   : > { %p3076_p0 = scmp.ne.s32.totalorder %s351_s1, %s3075_s19  ;;  %s3080_s5 = sshll.u32 %s3227_s23, 4  ;;  %s3081_s5 = int_to_ptr.vmem [resolvable:$false] %s3080_s5 }
  0x60   : > { %s3082_s29 = scalar_lea.vmem %s3081_s5, 2048  ;;  %p3083_p9 = scmp.lt.s32.totalorder %s351_s1, %s3081_s5 }
  0x61   : > { %p3078_p1 = pnand %p3076_p0, %p2980_p3  ;;  %p3084_p10 = scmp.lt.s32.totalorder %s3082_s29, %s3075_s19 }
  0x63   : > { %p3079_p7 = pneg %p3078_p1  ;;  %p3085_p5 = por %p3084_p10, %p3083_p9 }
  0x65   : > { %p3086_p11 = pnand %p3085_p5, %p3079_p7 }
  0x67   : > { %3089 = shalt.err (!%p3086_p11)
}
  0x68   : > { %2757 = dma.hbm_to_vmem [thread:$0]  (!%p3388_p4), %s349_s2, 1024, %s351_s1, %s340_s14, %s3887_s27, %s3887_s27, %s3886_s6  }
  0x69   : > { %376 = sbr.rel (%p3420_p6) target bundleno = 2710 (0xa96), region = 48  ;;  %s378_s16 = sand.u32 (!%p3420_p6), 1, %s3194_s28  }
  0x6a   : > { %s2734_s22 = smul.u32 (!%p3420_p6), 192, %s378_s16  ;;  %s379_s13 = scalar_lea.sflag (!%p3420_p6), [#allocation3], %s378_s16 }
  0x6c   : > { %s3466_s18 = scalar_lea.vmem (!%p3420_p6), [#allocation2], %s2734_s22 }
  0x6e   : > { %3161 = dma.done.wait (%p3358_p8), %s379_s13, 3072  }
  0x6f   : > { %3163 = vsyncadd (%p3358_p8), %s379_s13, 4294964224  ;;  %s387_s15 = sand.u32 1, %s3333_s12   ;;  %s2388_s10 = sshll.u32 %s378_s16, 6 }
  0x70   : > { %s388_s17 = scalar_lea.sflag [#allocation6], %s387_s15  ;;  %s3473_s6 = scalar_lea.vmem [#allocation5], %s2388_s10 }
  0x71   : > { %3165 = dma.done.wait (%p3358_p8), %s388_s17, 2048  }
  0x72   : > { %3167 = vsyncadd (%p3358_p8), %s388_s17, 4294965248  ;;  %s3479_s7 = scalar_lea.vmem [#allocation7], %s2388_s10  ;;  %s406_s27 = scalar_lea.sflag [#allocation9], %s378_s16 }
  0x73   : > { %s3481_s21 = scalar_lea.vmem [#allocation8], %s2388_s10 }
  0x74   : > { %3169 = dma.done.wait (%p3358_p8), %s406_s27, 1024  }
  0x75   : > { %3171 = vsyncadd (%p3358_p8), %s406_s27, 4294966272  ;;  %s465_s12 = sand.u32 1, %s3182_s25   ;;  %s2392_s26 = sshll.u32 %s3206_s8, 1 }
  0x76   : > { %s2391_s2 = sshll.u32 %s465_s12, 4  ;;  %p469_p4 = scmp.lt.s32.totalorder %s2392_s26, 3 }
  0x77   : > { %p474_p3 = scmp.lt.s32.totalorder %s3202_s30, 1  ;;  %s3888_s16 = sld [smem:[#allocation27_spill]] }
  0x78   : > { %s3916_s26 = smov (!%p469_p4, %s2392_s26), 3  ;;  %s3889_s10 = sld [smem:[#allocation28_spill]] }
  0x79   : > { %s3493_s24 = scalar_select %p474_p3, %s3202_s30, 1 }
  0x7a   : > { %s2393_s1 = sshll.u32 %s3916_s26, 3  ;;  %s3508_s27 = scalar_lea.vmem [#allocation10], %s2391_s2 }
  0x7b   : > { %s472_s19 = scalar_lea.vmem %s3841_s0, %s2393_s1  ;;  %s2480_s23 = sshll.u32 %s3493_s24, 4 }
  0x7c   : > { %p2396_p8 = scmp.ne.s32.totalorder %s3202_s30, 0 }
  0x7d   : > { %s3502_s22 = scalar_lea.vmem %s3888_s16, %s2480_s23 }
  0x7e   : > { %s481_s17 = scalar_lea.vmem %s3889_s10, %s3493_s24  ;;  %487 = sbr.rel (%p2396_p8) target bundleno = 133 (0x85), region = 68 }
  0x83   : > { %v488_v0 = vld [vmem:[%s472_s19] sm:$0xff]  ;;  %v489_v1 = vld [vmem:[%s472_s19 + $0x8] sm:$0xff] }
  0x84   : > { %490 = vst [vmem:[%s3508_s27] sm:$0xff] %v488_v0  ;;  %491 = vst [vmem:[%s3508_s27 + $0x8] sm:$0xff] %v489_v1 }
  0x85 PF: > { %v2881_v2 = vld [vmem:[%s3466_s18 + $0xac] ss:$12 sps:$4 sm:$0xff]   ;;  %v2883_v3 = vld [vmem:[%s3466_s18 + $0xa8] ss:$12 sps:$4 sm:$0xff]   ;;  %v3228_v4 = vmov 0.0   ;;  %v3229_v5 = vmov 0   ;;  %v742_v31 = vlaneseq }
  0x86   : > { %2556 = vmatprep.subr.bf16.mxu1 %v3228_v4  ;;  %690 = vmatprep.mubr.bf16.mxu0 %v3229_v5  ;;  %v2884_v6 = vld [vmem:[%s3466_s18 + $0x94] ss:$12 sps:$4 sm:$0xff]   ;;  %v2886_v7 = vld [vmem:[%s3466_s18 + $0x90] ss:$12 sps:$4 sm:$0xff]   ;;  %vm3230_vm0 = vmmov 0   ;;  %vm778_vm1 = vcmask 64512  }
  0x87   : > { %658 = vmatprep.subr.bf16.mxu0 %v2881_v2  ;;  %2572 = vmatprep.mubr.msk.bf16.mxu1 %vm3230_vm0, %v3228_v4  ;;  %v2887_v8 = vld [vmem:[%s3466_s18 + $0xb0] ss:$12 sps:$4 sm:$0xff]   ;;  %v2891_v10 = vld [vmem:[%s3466_s18 + $0x98] ss:$12 sps:$4 sm:$0xff]   ;;  %v2895_v13 = vld [vmem:[%s3466_s18 + $0x80] ss:$12 sps:$4 sm:$0xff]  }
  0x88   : > { %659 = vmatpush1.bf16.msra.mxu0 %v2883_v3  ;;  %v2888_v9 = vld [vmem:[%s3466_s18 + $0x7c] ss:$12 sps:$4 sm:$0xff]   ;;  %2557 = vmatpush3.bf16.msra.mxu1 %v2887_v8  ;;  %v2890_v11 = vld [vmem:[%s3466_s18 + $0x78] ss:$12 sps:$4 sm:$0xff]   ;;  %v2894_v14 = vld [vmem:[%s3466_s18 + $0x60] ss:$12 sps:$4 sm:$0xff]  }
  0x89   : > { %660 = vmatprep.subr.bf16.mxu0 %v2884_v6  ;;  %2558 = vmatprep.subr.bf16.mxu1 %v3228_v4  ;;  %v2892_v12 = vld [vmem:[%s3466_s18 + $0x64] ss:$12 sps:$4 sm:$0xff]   ;;  %v2896_v15 = vld [vmem:[%s3466_s18 + $0x4c] ss:$12 sps:$4 sm:$0xff]   ;;  %v2899_v16 = vld [vmem:[%s3466_s18 + $0x68] ss:$12 sps:$4 sm:$0xff]  }
  0x8a   : > { %v2898_v17 = vld [vmem:[%s3466_s18 + $0x48] ss:$12 sps:$4 sm:$0xff]   ;;  %v2903_v19 = vld [vmem:[%s3466_s18 + $0x50] ss:$12 sps:$4 sm:$0xff]   ;;  %v2907_v22 = vld [vmem:[%s3466_s18 + $0x38] ss:$12 sps:$4 sm:$0xff]  }
  0x8b   : > { %v2900_v18 = vld [vmem:[%s3466_s18 + $0x34] ss:$12 sps:$4 sm:$0xff]   ;;  %v2902_v20 = vld [vmem:[%s3466_s18 + $0x30] ss:$12 sps:$4 sm:$0xff]   ;;  %v2906_v23 = vld [vmem:[%s3466_s18 + $0x18] ss:$12 sps:$4 sm:$0xff]  }
  0x8c   : > { %661 = vmatpush1.bf16.msra.mxu0 %v2886_v7  ;;  %2559 = vmatpush3.bf16.msra.mxu1 %v2891_v10  ;;  %v2904_v21 = vld [vmem:[%s3466_s18 + $0x1c] ss:$12 sps:$4 sm:$0xff]   ;;  %v2908_v24 = vld [vmem:[%s3466_s18 + $0x4] ss:$12 sps:$4 sm:$0xff]   ;;  %v2911_v25 = vld [vmem:[%s3466_s18 + $0x20] ss:$12 sps:$4 sm:$0xff]  }
  0x8d   : > { %662 = vmatprep.subr.bf16.mxu0 %v2888_v9  ;;  %2560 = vmatprep.subr.bf16.mxu1 %v3228_v4  ;;  %v2910_v26 = vld [vmem:[%s3466_s18] ss:$12 sps:$4 sm:$0xff]   ;;  %v2912_v29 = vld [vmem:[%s3466_s18 + $0x8] ss:$12 sps:$4 sm:$0xff]   ;;  %v3561_v32 = vshrl.u32 %v742_v31, 7  ;;  %s3231_s30 = smov 120  }
  0x8e   : > { %v3545_v27 = vld [vmem:[%s3508_s27] sm:$0xff]  ;;  %v3548_v28 = vld [vmem:[%s3508_s27 + $0x8] sm:$0xff]  ;;  %s3232_s18 = smov 112   ;;  %vm916_vm2 = vcmask 1043456   ;;  %s3233_s26 = smov 104   ;;  %vm1746_vm3 = vcmask 130048  }
  0x8f   : > { %v494_v30 = vpack.c.bf16 %v3548_v28, %v3545_v27  ;;  %v744_v33 = vsub.s32 0, %v3561_v32  ;;  %v3565_v34 = vld [vmem:[%s3502_s22] sm:$0xff]  ;;  %v750_v35 = vsub.s32 1, %v3561_v32  ;;  %v756_v38 = vsub.s32 2, %v3561_v32  ;;  %s3234_s2 = smov 8   ;;  %s3235_s1 = smov 16  }
  0x90   : > { %663 = vmatpush1.bf16.msra.mxu0 %v2890_v11  ;;  %2561 = vmatpush3.bf16.msra.mxu1 %v2895_v13  ;;  %s3236_s14 = smov 24   ;;  %vm1749_vm4 = vcmask 195584   ;;  %vm1752_vm5 = vcmask 261120   ;;  %s2487_s24 = sshll.u32 %s3206_s8, 8 }
  0x91   : > { %664 = vmatprep.subr.bf16.mxu0 %v2892_v12  ;;  %2562 = vmatprep.subr.bf16.mxu1 %v3228_v4  ;;  %v745_v36 = vrot.slane %v3565_v34, %v744_v33  ;;  %v751_v37 = vrot.slane %v3565_v34, %v750_v35  ;;  %v757_v45 = vrot.slane %v3565_v34, %v756_v38  ;;  %vm2451_vm6 = vmpackc.low %vm1752_vm5, %vm1752_vm5  ;;  %s2190_s19 = sshll.u32 %s3508_s27, 4  ;;  %s3892_s29 = sld [smem:[#allocation29_spill]]  ;;  %s3775_s19 = int_to_ptr.vmem [resolvable:$true] %s2190_s19 }
  0x92   : > { %s3090_s15 = scalar_lea.vmem %s3775_s19, 256  ;;  %s3237_s8 = smov [#allocation10]  }
  0x93   : > { %p3091_p6 = scmp.ne.s32.totalorder %s3775_s19, %s3090_s15  ;;  %s3094_s10 = sshll.u32 %s3237_s8, 4  ;;  %s3095_s10 = int_to_ptr.vmem [resolvable:$false] %s3094_s10 }
  0x94   : > { %665 = vmatpush1.bf16.msra.mxu0 %v2894_v14  ;;  %2563 = vmatpush3.bf16.msra.mxu1 %v2899_v16  ;;  %p3097_p1 = scmp.lt.s32.totalorder %s3775_s19, %s3095_s10 }
  0x95   : > { %666 = vmatprep.subr.bf16.mxu0 %v2896_v15  ;;  %2564 = vmatprep.subr.bf16.mxu1 %v3228_v4  ;;  %p3092_p13 = pnand %p3091_p6, %p3371_p12 }
  0x97   : > { %s3893_s16 = smov %s3892_s29  ;;  %s3773_s13 = scalar_lea.hbm %s3892_s29, %s2487_s24 }
  0x98   : > { %667 = vmatpush1.bf16.msra.mxu0 %v2898_v17  ;;  %2565 = vmatpush3.bf16.msra.mxu1 %v2903_v19  ;;  %p3093_p0 = pneg %p3092_p13 }
  0x99   : > { %668 = vmatprep.subr.bf16.mxu0 %v2900_v18  ;;  %2566 = vmatprep.subr.bf16.mxu1 %v3228_v4 }
  0x9c   : > { %669 = vmatpush1.bf16.msra.mxu0 %v2902_v20  ;;  %2567 = vmatpush3.bf16.msra.mxu1 %v2907_v22 }
  0x9d   : > { %670 = vmatprep.subr.bf16.mxu0 %v2904_v21  ;;  %2568 = vmatprep.subr.bf16.mxu1 %v3228_v4 }
  0xa0   : > { %671 = vmatpush1.bf16.msra.mxu0 %v2906_v23  ;;  %2569 = vmatpush3.bf16.msra.mxu1 %v2911_v25 }
  0xa1   : > { %672 = vmatprep.subr.bf16.mxu0 %v2908_v24  ;;  %2570 = vmatprep.subr.bf16.mxu1 %v3228_v4 }
  0xa4   : > { %673 = vmatpush1.bf16.msra.mxu0 %v2910_v26  ;;  %2571 = vmatpush3.bf16.msra.mxu1 %v2912_v29 }
  0xa5   : > { %2600 = vmatprep.subr.bf16.mxu0 %v3228_v4  ;;  %2576 = vmatprep.subr.bf16.mxu1 %v3228_v4 }
  0xa7   : > { %691 = vmatmul.mubr.bf16.vlgmr.msra.gmra.mxu0 %v494_v30  ;;  %2573 = vmatmul.mubr.bf16.vlgmr.msra.gmra.mxu1 %v494_v30 }
  0xa8   : > { %2602 = vmatprep.mubr.msk.bf16.mxu0 %vm3230_vm0, %v3228_v4  ;;  %2578 = vmatprep.mubr.msk.bf16.mxu1 %vm3230_vm0, %v3228_v4 }
 0x167   : > { %v692_v39 = vpop.f32.mrf.mxu0  ;;  %v735_v42 = vpop.f32.mrf.mxu1 }
 0x168   : > { %v746_v40 = vadd.f32 %v745_v36, %v692_v39  ;;  %v758_v50 = vadd.f32 %v757_v45, %v735_v42 }
 0x169   : > { %v694_v41 = vpop.f32.mrf.mxu0  ;;  %v2574_v47 = vpop.f32.mrf.mxu1 }
 0x16a   : > { %v2481_v43 = vpack.c.bf16 %v746_v40, %v746_v40  ;;  %v752_v44 = vadd.f32 %v751_v37, %v694_v41  ;;  %v2485_v60 = vpack.c.bf16 %v758_v50, %v758_v50 }
 0x16b   : > { %v696_v46 = vpop.f32.mrf.mxu0  ;;  %v738_v52 = vpop.f32.mrf.mxu1 }
 0x16c   : > { %v2483_v48 = vpack.c.bf16 %v752_v44, %v752_v44  ;;  %v747_v49 = vadd.f32 %v745_v36, %v696_v46  ;;  %1006 = vrot.lane.b32.xlu1 %v2481_v43, %s3231_s30  ;;  %v759_v55 = vadd.f32 %v757_v45, %v738_v52  ;;  %v918_v62 = vsel %vm916_vm2, %v2485_v60, 0 }
 0x16d   : > { %v698_v51 = vpop.f32.mrf.mxu0  ;;  %v2575_v57 = vpop.f32.mrf.mxu1 }
 0x16e   : > { %v2482_v53 = vpack.c.bf16 %v747_v49, %v747_v49  ;;  %v753_v54 = vadd.f32 %v751_v37, %v698_v51  ;;  %1008 = vrot.lane.b32.xlu0 %v2483_v48, %s3231_s30  ;;  %v783_v56 = vsel %vm778_vm1, %v2483_v48, 0  ;;  %v3573_v59 = vpack.c.bf16 %v759_v55, %v759_v55 }
 0x16f   : > { %2577 = vmatpush3.bf16.xpose.msra.mxu1 %v783_v56 }
 0x170   : > { %v2484_v58 = vpack.c.bf16 %v753_v54, %v753_v54  ;;  %1056 = vrot.lane.b32.xlu1 %v2482_v53, %s3231_s30  ;;  %2582 = vmatprep.subr.bf16.mxu1 %v3228_v4  ;;  %v964_v57 = vsel %vm916_vm2, %v3573_v59, 0 }
 0x172   : > { %1058 = vrot.lane.b32.xlu0 %v2484_v58, %s3231_s30  ;;  %v829_v61 = vsel %vm778_vm1, %v2484_v58, 0 }
 0x174   : > { %1196 = vrot.lane.b32.xlu1 %v3573_v59, %s3231_s30 }
 0x176   : > { %2579 = vmatmul.mubr.msk.bf16.vlgmr.msra.gmra.mxu1 %vm778_vm1, %v2481_v43  ;;  %1148 = vrot.lane.b32.xlu0 %v2485_v60, %s3231_s30 }
 0x177   : > { %2583 = vmatpush3.bf16.xpose.msra.mxu1 %v829_v61  ;;  %2584 = vmatprep.mubr.msk.bf16.mxu1 %vm3230_vm0, %v3228_v4 }
 0x178   : > { %1296 = vrot.lane.b32.xlu1 %v2484_v58, %s3232_s18  ;;  %2588 = vmatprep.subr.bf16.mxu1 %v3228_v4 }
 0x17a   : > { %1246 = vrot.lane.b32.xlu0 %v2483_v48, %s3232_s18 }
 0x17c   : > { %1294 = vrot.lane.b32.xlu1 %v2482_v53, %s3232_s18 }
 0x17e   : > { %1244 = vrot.lane.b32.xlu0 %v2481_v43, %s3232_s18  ;;  %2585 = vmatmul.mubr.msk.bf16.vlgmr.msra.gmra.mxu1 %vm778_vm1, %v2482_v53 }
 0x17f   : > { %2589 = vmatpush3.bf16.msra.mxu1 %v918_v62  ;;  %2590 = vmatprep.mubr.msk.bf16.mxu1 %vm3230_vm0, %v3228_v4 }
 0x180   : > { %1434 = vrot.lane.b32.xlu1 %v3573_v59, %s3232_s18  ;;  %2594 = vmatprep.subr.bf16.mxu1 %v3228_v4 }
 0x182   : > { %1386 = vrot.lane.b32.xlu0 %v2485_v60, %s3232_s18 }
 0x184   : > { %1534 = vrot.lane.b32.xlu1 %v2484_v58, %s3233_s26 }
 0x186   : > { %1484 = vrot.lane.b32.xlu0 %v2483_v48, %s3233_s26 }
 0x188   : > { %1532 = vrot.lane.b32.xlu1 %v2482_v53, %s3233_s26 }
 0x18a   : > { %1482 = vrot.lane.b32.xlu0 %v2481_v43, %s3233_s26 }
 0x18c   : > { %1672 = vrot.lane.b32.xlu1 %v3573_v59, %s3233_s26 }
 0x18e   : > { %1624 = vrot.lane.b32.xlu0 %v2485_v60, %s3233_s26 }
 0x1de   : > { %v1007_v2 = vpop.permute.xlu1 %1006 }
 0x1e0   : > { %v1009_v63 = vpop.permute.xlu0 %1008 }
 0x1e1   : > { %v1014_v0 = vsel %vm778_vm1, %v1009_v63, 0 }
 0x1e2   : > { %2601 = vmatpush3.bf16.xpose.msra.mxu0 %v1014_v0  ;;  %v1057_v62 = vpop.permute.xlu1 %1056 }
 0x1e3   : > { %2612 = vmatprep.subr.bf16.mxu0 %v3228_v4 }
 0x1e4   : > { %v3591_v1 = vpop.permute.xlu0 %1058 }
 0x1e5   : > { %v1064_v63 = vsel %vm778_vm1, %v3591_v1, 0 }
 0x1e6   : > { %v1197_v59 = vpop.permute.xlu1 %1196 }
 0x1e7   : > { %v1202_v0 = vsel %vm916_vm2, %v1197_v59, 0 }
 0x1e8   : > { %v1149_v3 = vpop.permute.xlu0 %1148 }
 0x1e9   : > { %v1154_v5 = vsel %vm916_vm2, %v1149_v3, 0  ;;  %2603 = vmatmul.mubr.msk.bf16.vlgmr.msra.gmra.mxu0 %vm778_vm1, %v1007_v2 }
 0x1ea   : > { %2613 = vmatpush3.bf16.msra.mxu0 %v1154_v5  ;;  %2614 = vmatprep.mubr.msk.bf16.mxu0 %vm3230_vm0, %v3228_v4 }
 0x1eb   : > { %2624 = vmatprep.subr.bf16.mxu0 %v3228_v4 }
 0x236   : > { %v819_v6 = vpop.f32.mrf.mxu1 }
 0x237   : > { %v871_v7 = vmul.f32 0.17677669, %v819_v6 }
 0x238   : > { %v2580_v8 = vpop.f32.mrf.mxu1 }
 0x239   : > { %v873_v9 = vsel %vm778_vm1, %v871_v7, -inf }
 0x23a   : > { %v874_v10 = vrot.slane %v873_v9, 4  ;;  %v822_v11 = vpop.f32.mrf.mxu1 }
 0x23c   : > { %v875_v12 = vmax.f32 %v873_v9, %v874_v10  ;;  %v2581_v13 = vpop.f32.mrf.mxu1 }
 0x23e   : > { %v876_v14 = vrot.slane %v875_v12, 2  ;;  %v865_v15 = vpop.f32.mrf.mxu1 }
 0x23f   : > { %v872_v16 = vmul.f32 0.17677669, %v865_v15 }
 0x240   : > { %v877_v17 = vmax.f32 %v875_v12, %v876_v14  ;;  %v2586_v18 = vpop.f32.mrf.mxu1 }
 0x241   : > { %v880_v19 = vsel %vm778_vm1, %v872_v16, -inf }
 0x242   : > { %v878_v20 = vrot.slane %v877_v17, 1  ;;  %v881_v21 = vrot.slane %v880_v19, 4  ;;  %v868_v22 = vpop.f32.mrf.mxu1 }
 0x244   : > { %v879_v23 = vmax.f32 %v877_v17, %v878_v20  ;;  %v882_v24 = vmax.f32 %v880_v19, %v881_v21  ;;  %v2587_v25 = vpop.f32.mrf.mxu1 }
 0x245   : > { %v1247_v25 = vpop.permute.xlu0 %1246 }
 0x246   : > { %v887_v26 = vsub.f32 %v871_v7, %v879_v23  ;;  %v883_v29 = vrot.slane %v882_v24, 2 }
 0x248   : > { %v889_v30 = vmul.f32 1.442695, %v887_v26  ;;  %v884_v31 = vmax.f32 %v882_v24, %v883_v29 }
 0x24a   : > { %2937 = vpow2.f32 %v889_v30  ;;  %v885_v33 = vrot.slane %v884_v31, 1  ;;  %v1252_v30 = vsel %vm778_vm1, %v1247_v25, 0 }
 0x24c   : > { %v886_v35 = vmax.f32 %v884_v31, %v885_v33  ;;  %v1245_v31 = vpop.permute.xlu0 %1244 }
 0x24e   : > { %v888_v36 = vsub.f32 %v872_v16, %v886_v35 }
 0x250   : > { %v891_v37 = vmul.f32 1.442695, %v888_v36  ;;  %v1387_v33 = vpop.permute.xlu0 %1386 }
 0x251   : > { %v1392_v35 = vsel %vm916_vm2, %v1387_v33, 0 }
 0x252   : > { %2939 = vpow2.f32 %v891_v37 }
 0x257   : > { %v2938_v38 = vpop.eup %2937 }
 0x258   : > { %v893_v39 = vsel %vm778_vm1, %v2938_v38, 0.0 }
 0x259   : > { %v894_v40 = vrot.slane %v893_v39, 4 }
 0x25b   : > { %v895_v41 = vadd.f32 %v894_v40, %v893_v39 }
 0x25d   : > { %v896_v42 = vrot.slane %v895_v41, 2 }
 0x25f   : > { %v2940_v43 = vpop.eup %2939  ;;  %v897_v44 = vadd.f32 %v896_v42, %v895_v41 }
 0x260   : > { %v900_v45 = vsel %vm778_vm1, %v2940_v43, 0.0 }
 0x261   : > { %v898_v46 = vrot.slane %v897_v44, 1  ;;  %v901_v47 = vrot.slane %v900_v45, 4 }
 0x263   : > { %v899_v48 = vadd.f32 %v898_v46, %v897_v44  ;;  %v902_v49 = vadd.f32 %v901_v47, %v900_v45 }
 0x265   : > { %2941 = vrcp.f32 %v899_v48  ;;  %v903_v50 = vrot.slane %v902_v49, 2 }
 0x267   : > { %v904_v51 = vadd.f32 %v903_v50, %v902_v49 }
 0x269   : > { %v905_v52 = vrot.slane %v904_v51, 1 }
 0x26b   : > { %v906_v53 = vadd.f32 %v905_v52, %v904_v51 }
 0x26d   : > { %2943 = vrcp.f32 %v906_v53 }
 0x272   : > { %v2942_v54 = vpop.eup %2941 }
 0x273   : > { %v909_v55 = vmul.f32 %v2942_v54, %v2938_v38 }
 0x275   : > { %v911_v56 = vpack.c.bf16 %v909_v55, %v909_v55 }
 0x277   : > { %2591 = vmatmul.mubr.msk.bf16.vlgmr.msra.gmra.mxu1 %vm778_vm1, %v911_v56 }
 0x278   : > { %2595 = vmatpush3.bf16.msra.mxu1 %v964_v57  ;;  %2596 = vmatprep.mubr.msk.bf16.mxu1 %vm3230_vm0, %v3228_v4 }
 0x279   : > { %2606 = vmatprep.subr.bf16.mxu1 %v3228_v4 }
 0x27a   : > { %v2944_v58 = vpop.eup %2943 }
 0x27b   : > { %v910_v60 = vmul.f32 %v2944_v58, %v2940_v43 }
 0x27d   : > { %v912_v61 = vpack.c.bf16 %v910_v60, %v910_v60 }
 0x27f   : > { %2597 = vmatmul.mubr.msk.bf16.vlgmr.msra.gmra.mxu1 %vm778_vm1, %v912_v61 }
 0x280   : > { %2607 = vmatpush3.bf16.xpose.msra.mxu1 %v1064_v63  ;;  %2608 = vmatprep.mubr.msk.bf16.mxu1 %vm3230_vm0, %v3228_v4 }
 0x281   : > { %2618 = vmatprep.subr.bf16.mxu1 %v3228_v4 }
 0x287   : > { %2609 = vmatmul.mubr.msk.bf16.vlgmr.msra.gmra.mxu1 %vm778_vm1, %v1057_v62 }
 0x288   : > { %2619 = vmatpush3.bf16.msra.mxu1 %v1202_v0  ;;  %2620 = vmatprep.mubr.msk.bf16.mxu1 %vm3230_vm0, %v3228_v4 }
 0x289   : > { %2630 = vmatprep.subr.bf16.mxu1 %v3228_v4 }
 0x2a9   : > { %v1050_v1 = vpop.f32.mrf.mxu0 }
 0x2aa   : > { %v1106_v2 = vmul.f32 0.17677669, %v1050_v1 }
 0x2ab   : > { %v2604_v3 = vpop.f32.mrf.mxu0 }
 0x2ac   : > { %v1108_v5 = vsel %vm778_vm1, %v1106_v2, -inf  ;;  %v1297_v3 = vpop.permute.xlu1 %1296 }
 0x2ad   : > { %v1109_v6 = vrot.slane %v1108_v5, 4  ;;  %v1053_v7 = vpop.f32.mrf.mxu0 }
 0x2ae   : > { %v1302_v7 = vsel %vm778_vm1, %v1297_v3, 0 }
 0x2af   : > { %v1110_v8 = vmax.f32 %v1108_v5, %v1109_v6  ;;  %v2605_v9 = vpop.f32.mrf.mxu0 }
 0x2b1   : > { %v1111_v10 = vrot.slane %v1110_v8, 2 }
 0x2b3   : > { %v1112_v11 = vmax.f32 %v1110_v8, %v1111_v10  ;;  %v1295_v8 = vpop.permute.xlu1 %1294 }
 0x2b5   : > { %v1113_v12 = vrot.slane %v1112_v11, 1 }
 0x2b7   : > { %v1114_v13 = vmax.f32 %v1112_v11, %v1113_v12  ;;  %v1435_v9 = vpop.permute.xlu1 %1434 }
 0x2b8   : > { %v1440_v10 = vsel %vm916_vm2, %v1435_v9, 0 }
 0x2b9   : > { %v1122_v14 = vsub.f32 %v1106_v2, %v1114_v13 }
 0x2bb   : > { %v1124_v15 = vmul.f32 1.442695, %v1122_v14 }
 0x2bd   : > { %2945 = vpow2.f32 %v1124_v15 }
 0x2ca   : > { %v2946_v16 = vpop.eup %2945 }
 0x2cb   : > { %v1128_v17 = vsel %vm778_vm1, %v2946_v16, 0.0 }
 0x2cc   : > { %v1129_v18 = vrot.slane %v1128_v17, 4 }
 0x2ce   : > { %v1130_v19 = vadd.f32 %v1129_v18, %v1128_v17 }
 0x2d0   : > { %v1131_v20 = vrot.slane %v1130_v19, 2 }
 0x2d2   : > { %v1132_v21 = vadd.f32 %v1131_v20, %v1130_v19 }
 0x2d4   : > { %v1133_v22 = vrot.slane %v1132_v21, 1 }
 0x2d6   : > { %v1134_v23 = vadd.f32 %v1133_v22, %v1132_v21 }
 0x2d8   : > { %2947 = vrcp.f32 %v1134_v23 }
 0x2e5   : > { %v2948_v24 = vpop.eup %2947 }
 0x2e6   : > { %v1144_v26 = vmul.f32 %v2948_v24, %v2946_v16 }
 0x2e8   : > { %v1146_v29 = vpack.c.bf16 %v1144_v26, %v1144_v26 }
 0x2ea   : > { %2615 = vmatmul.mubr.msk.bf16.vlgmr.msra.gmra.mxu0 %vm778_vm1, %v1146_v29 }
 0x2eb   : > { %2625 = vmatpush3.bf16.xpose.msra.mxu0 %v1252_v30  ;;  %2626 = vmatprep.mubr.msk.bf16.mxu0 %vm3230_vm0, %v3228_v4 }
 0x2ec   : > { %2636 = vmatprep.subr.bf16.mxu0 %v3228_v4 }
 0x2f2   : > { %2627 = vmatmul.mubr.msk.bf16.vlgmr.msra.gmra.mxu0 %vm778_vm1, %v1245_v31 }
 0x2f3   : > { %2637 = vmatpush3.bf16.msra.mxu0 %v1392_v35  ;;  %2638 = vmatprep.mubr.msk.bf16.mxu0 %vm3230_vm0, %v3228_v4 }
 0x2f4   : > { %2648 = vmatprep.subr.bf16.mxu0 %v3228_v4 }
 0x337   : > { %v3631_v36 = vpop.f32.mrf.mxu1 }
 0x339   : > { %v2592_v37 = vpop.f32.mrf.mxu1 }
 0x33b   : > { %v957_v38 = vpop.f32.mrf.mxu1 }
 0x33d   : > { %v2593_v39 = vpop.f32.mrf.mxu1 }
 0x33f   : > { %v3633_v40 = vpop.f32.mrf.mxu1 }
 0x341   : > { %v2598_v41 = vpop.f32.mrf.mxu1 }
 0x343   : > { %v1003_v42 = vpop.f32.mrf.mxu1 }
 0x345   : > { %v2599_v43 = vpop.f32.mrf.mxu1 }
 0x347   : > { %v1100_v44 = vpop.f32.mrf.mxu1 }
 0x348   : > { %v1107_v45 = vmul.f32 0.17677669, %v1100_v44  ;;  %v1485_v44 = vpop.permute.xlu0 %1484 }
 0x349   : > { %v2610_v46 = vpop.f32.mrf.mxu1 }
 0x34a   : > { %v1115_v47 = vsel %vm778_vm1, %v1107_v45, -inf }
 0x34b   : > { %v1116_v48 = vrot.slane %v1115_v47, 4  ;;  %v1103_v49 = vpop.f32.mrf.mxu1 }
 0x34d   : > { %v1117_v50 = vmax.f32 %v1115_v47, %v1116_v48  ;;  %v2611_v51 = vpop.f32.mrf.mxu1  ;;  %v1490_v47 = vsel %vm778_vm1, %v1485_v44, 0  ;;  %v1483_v48 = vpop.permute.xlu0 %1482 }
 0x34f   : > { %v1118_v52 = vrot.slane %v1117_v50, 2 }
 0x351   : > { %v1119_v53 = vmax.f32 %v1117_v50, %v1118_v52  ;;  %v1625_v49 = vpop.permute.xlu0 %1624 }
 0x352   : > { %v1630_v50 = vsel %vm916_vm2, %v1625_v49, 0 }
 0x353   : > { %v1120_v54 = vrot.slane %v1119_v53, 1 }
 0x355   : > { %v1121_v55 = vmax.f32 %v1119_v53, %v1120_v54 }
 0x357   : > { %v1123_v56 = vsub.f32 %v1107_v45, %v1121_v55 }
 0x359   : > { %v1126_v57 = vmul.f32 1.442695, %v1123_v56 }
 0x35b   : > { %2949 = vpow2.f32 %v1126_v57 }
 0x368   : > { %v2950_v58 = vpop.eup %2949 }
 0x369   : > { %v1135_v60 = vsel %vm778_vm1, %v2950_v58, 0.0 }
 0x36a   : > { %v1136_v61 = vrot.slane %v1135_v60, 4 }
 0x36c   : > { %v1137_v62 = vadd.f32 %v1136_v61, %v1135_v60 }
 0x36e   : > { %v1138_v63 = vrot.slane %v1137_v62, 2 }
 0x370   : > { %v1139_v59 = vadd.f32 %v1138_v63, %v1137_v62 }
 0x372   : > { %v1140_v0 = vrot.slane %v1139_v59, 1 }
 0x374   : > { %v1141_v1 = vadd.f32 %v1140_v0, %v1139_v59 }
 0x376   : > { %2951 = vrcp.f32 %v1141_v1 }
 0x383   : > { %v2952_v2 = vpop.eup %2951 }
 0x384   : > { %v1145_v5 = vmul.f32 %v2952_v2, %v2950_v58 }
 0x386   : > { %v1147_v6 = vpack.c.bf16 %v1145_v5, %v1145_v5 }
 0x388   : > { %2621 = vmatmul.mubr.msk.bf16.vlgmr.msra.gmra.mxu1 %vm778_vm1, %v1147_v6 }
 0x389   : > { %2631 = vmatpush3.bf16.xpose.msra.mxu1 %v1302_v7  ;;  %2632 = vmatprep.mubr.msk.bf16.mxu1 %vm3230_vm0, %v3228_v4 }
 0x38a   : > { %2642 = vmatprep.subr.bf16.mxu1 %v3228_v4 }
 0x390   : > { %2633 = vmatmul.mubr.msk.bf16.vlgmr.msra.gmra.mxu1 %vm778_vm1, %v1295_v8 }
 0x391   : > { %2643 = vmatpush3.bf16.msra.mxu1 %v1440_v10  ;;  %2644 = vmatprep.mubr.msk.bf16.mxu1 %vm3230_vm0, %v3228_v4 }
 0x392   : > { %2654 = vmatprep.subr.bf16.mxu1 %v3228_v4 }
 0x3aa   : > { %v1190_v11 = vpop.f32.mrf.mxu0 }
 0x3ac   : > { %v2616_v12 = vpop.f32.mrf.mxu0 }
 0x3ae   : > { %v1193_v13 = vpop.f32.mrf.mxu0 }
 0x3b0   : > { %v2617_v14 = vpop.f32.mrf.mxu0 }
 0x3b2   : > { %v1288_v15 = vpop.f32.mrf.mxu0 }
 0x3b3   : > { %v1344_v16 = vmul.f32 0.17677669, %v1288_v15 }
 0x3b4   : > { %v2628_v17 = vpop.f32.mrf.mxu0 }
 0x3b5   : > { %v1346_v18 = vsel %vm778_vm1, %v1344_v16, -inf }
 0x3b6   : > { %v1347_v19 = vrot.slane %v1346_v18, 4  ;;  %v1291_v20 = vpop.f32.mrf.mxu0 }
 0x3b8   : > { %v1348_v21 = vmax.f32 %v1346_v18, %v1347_v19  ;;  %v2629_v22 = vpop.f32.mrf.mxu0 }
 0x3ba   : > { %v1349_v23 = vrot.slane %v1348_v21, 2 }
 0x3bc   : > { %v1350_v24 = vmax.f32 %v1348_v21, %v1349_v23 }
 0x3be   : > { %v1351_v25 = vrot.slane %v1350_v24, 1 }
 0x3c0   : > { %v1352_v26 = vmax.f32 %v1350_v24, %v1351_v25 }
 0x3c2   : > { %v1360_v29 = vsub.f32 %v1344_v16, %v1352_v26  ;;  %v1535_v16 = vpop.permute.xlu1 %1534 }
 0x3c3   : > { %v1540_v19 = vsel %vm778_vm1, %v1535_v16, 0 }
 0x3c4   : > { %v1362_v30 = vmul.f32 1.442695, %v1360_v29 }
 0x3c6   : > { %2953 = vpow2.f32 %v1362_v30  ;;  %v1533_v20 = vpop.permute.xlu1 %1532 }
 0x3ca   : > { %v1673_v21 = vpop.permute.xlu1 %1672 }
 0x3cb   : > { %v1678_v22 = vsel %vm916_vm2, %v1673_v21, 0 }
 0x3d3   : > { %v2954_v31 = vpop.eup %2953 }
 0x3d4   : > { %v1366_v33 = vsel %vm778_vm1, %v2954_v31, 0.0 }
 0x3d5   : > { %v1367_v35 = vrot.slane %v1366_v33, 4 }
 0x3d7   : > { %v1368_v37 = vadd.f32 %v1367_v35, %v1366_v33 }
 0x3d9   : > { %v1369_v38 = vrot.slane %v1368_v37, 2 }
 0x3db   : > { %v1370_v39 = vadd.f32 %v1369_v38, %v1368_v37 }
 0x3dd   : > { %v1371_v41 = vrot.slane %v1370_v39, 1 }
 0x3df   : > { %v1372_v42 = vadd.f32 %v1371_v41, %v1370_v39 }
 0x3e1   : > { %2955 = vrcp.f32 %v1372_v42 }
 0x3ee   : > { %v2956_v43 = vpop.eup %2955 }
 0x3ef   : > { %v1382_v45 = vmul.f32 %v2956_v43, %v2954_v31 }
 0x3f1   : > { %v1384_v46 = vpack.c.bf16 %v1382_v45, %v1382_v45 }
 0x3f3   : > { %2639 = vmatmul.mubr.msk.bf16.vlgmr.msra.gmra.mxu0 %vm778_vm1, %v1384_v46 }
 0x3f4   : > { %2649 = vmatpush3.bf16.xpose.msra.mxu0 %v1490_v47  ;;  %2650 = vmatprep.mubr.msk.bf16.mxu0 %vm3230_vm0, %v3228_v4 }
 0x3f5   : > { %2660 = vmatprep.subr.bf16.mxu0 %v3228_v4 }
 0x3fb   : > { %2651 = vmatmul.mubr.msk.bf16.vlgmr.msra.gmra.mxu0 %vm778_vm1, %v1483_v48 }
 0x3fc   : > { %2661 = vmatpush3.bf16.msra.mxu0 %v1630_v50  ;;  %2662 = vmatprep.mubr.msk.bf16.mxu0 %vm3230_vm0, %v3228_v4 }
 0x3fd   : > { %2672 = vmatprep.subr.bf16.mxu0 %v3228_v4 }
 0x448   : > { %v1238_v51 = vpop.f32.mrf.mxu1 }
 0x449   : > { %v2866_v52 = vpack.i.bf16 %v1238_v51, %v1190_v11 }
 0x44a   : > { %v2622_v53 = vpop.f32.mrf.mxu1 }
 0x44b   : > { %2867 = vrot.lane.b32.xlu0 %v2866_v52, %s3234_s2 }
 0x44c   : > { %v1241_v54 = vpop.f32.mrf.mxu1 }
 0x44e   : > { %v2623_v55 = vpop.f32.mrf.mxu1 }
 0x450   : > { %v1338_v56 = vpop.f32.mrf.mxu1 }
 0x451   : > { %v1345_v57 = vmul.f32 0.17677669, %v1338_v56 }
 0x452   : > { %v2634_v58 = vpop.f32.mrf.mxu1 }
 0x453   : > { %v1353_v60 = vsel %vm778_vm1, %v1345_v57, -inf }
 0x454   : > { %v1354_v61 = vrot.slane %v1353_v60, 4  ;;  %v1341_v62 = vpop.f32.mrf.mxu1 }
 0x456   : > { %v1355_v63 = vmax.f32 %v1353_v60, %v1354_v61  ;;  %v2635_v59 = vpop.f32.mrf.mxu1 }
 0x458   : > { %v1356_v0 = vrot.slane %v1355_v63, 2 }
 0x45a   : > { %v1357_v1 = vmax.f32 %v1355_v63, %v1356_v0 }
 0x45c   : > { %v1358_v2 = vrot.slane %v1357_v1, 1 }
 0x45e   : > { %v1359_v3 = vmax.f32 %v1357_v1, %v1358_v2 }
 0x460   : > { %v1361_v5 = vsub.f32 %v1345_v57, %v1359_v3 }
 0x462   : > { %v1364_v6 = vmul.f32 1.442695, %v1361_v5 }
 0x464   : > { %2957 = vpow2.f32 %v1364_v6 }
 0x471   : > { %v2958_v7 = vpop.eup %2957 }
 0x472   : > { %v1373_v8 = vsel %vm778_vm1, %v2958_v7, 0.0 }
 0x473   : > { %v1374_v9 = vrot.slane %v1373_v8, 4 }
 0x475   : > { %v1375_v10 = vadd.f32 %v1374_v9, %v1373_v8 }
 0x477   : > { %v1376_v11 = vrot.slane %v1375_v10, 2 }
 0x479   : > { %v1377_v12 = vadd.f32 %v1376_v11, %v1375_v10 }
 0x47b   : > { %v1378_v13 = vrot.slane %v1377_v12, 1 }
 0x47d   : > { %v1379_v14 = vadd.f32 %v1378_v13, %v1377_v12 }
 0x47f   : > { %2959 = vrcp.f32 %v1379_v14 }
 0x48c   : > { %v2960_v15 = vpop.eup %2959 }
 0x48d   : > { %v1383_v17 = vmul.f32 %v2960_v15, %v2958_v7 }
 0x48f   : > { %v1385_v18 = vpack.c.bf16 %v1383_v17, %v1383_v17 }
 0x491   : > { %2645 = vmatmul.mubr.msk.bf16.vlgmr.msra.gmra.mxu1 %vm778_vm1, %v1385_v18 }
 0x492   : > { %2655 = vmatpush3.bf16.xpose.msra.mxu1 %v1540_v19  ;;  %2656 = vmatprep.mubr.msk.bf16.mxu1 %vm3230_vm0, %v3228_v4 }
 0x493   : > { %2666 = vmatprep.subr.bf16.mxu1 %v3228_v4 }
 0x499   : > { %2657 = vmatmul.mubr.msk.bf16.vlgmr.msra.gmra.mxu1 %vm778_vm1, %v1533_v20 }
 0x49a   : > { %2667 = vmatpush3.bf16.msra.mxu1 %v1678_v22  ;;  %2668 = vmatprep.mubr.msk.bf16.mxu1 %vm3230_vm0, %v3228_v4 }
 0x49b   : > { %2692 = vmatprep.subr.bf16.mxu1 %v3228_v4 }
 0x4b3   : > { %v1428_v23 = vpop.f32.mrf.mxu0 }
 0x4b5   : > { %v2640_v24 = vpop.f32.mrf.mxu0 }
 0x4b7   : > { %v1431_v25 = vpop.f32.mrf.mxu0 }
 0x4b9   : > { %v2641_v26 = vpop.f32.mrf.mxu0 }
 0x4bb   : > { %v1526_v29 = vpop.f32.mrf.mxu0 }
 0x4bc   : > { %v1582_v30 = vmul.f32 0.17677669, %v1526_v29 }
 0x4bd   : > { %v2652_v31 = vpop.f32.mrf.mxu0 }
 0x4be   : > { %v1584_v33 = vsel %vm778_vm1, %v1582_v30, -inf  ;;  %v2913_v31 = vld [vmem:[%s3473_s6 + $0x38] sm:$0xff]  }
 0x4bf   : > { %v1585_v35 = vrot.slane %v1584_v33, 4  ;;  %v1529_v37 = vpop.f32.mrf.mxu0 }
 0x4c0   : > { %v2916_v37 = vld [vmem:[%s3473_s6 + $0x20] sm:$0xff]  }
 0x4c1   : > { %v1586_v38 = vmax.f32 %v1584_v33, %v1585_v35  ;;  %v2653_v39 = vpop.f32.mrf.mxu0  ;;  %v2914_v33 = vld [vmem:[%s3473_s6 + $0x30] sm:$0xff]   ;;  %v2915_v35 = vld [vmem:[%s3473_s6 + $0x28] sm:$0xff]  }
 0x4c2   : > { %v2918_v39 = vld [vmem:[%s3473_s6 + $0x10] sm:$0xff]  }
 0x4c3   : > { %v1587_v41 = vrot.slane %v1586_v38, 2 }
 0x4c5   : > { %v1588_v42 = vmax.f32 %v1586_v38, %v1587_v41  ;;  %v2917_v38 = vld [vmem:[%s3473_s6 + $0x18] sm:$0xff]   ;;  %v2919_v41 = vld [vmem:[%s3473_s6 + $0x8] sm:$0xff]  }
 0x4c7   : > { %v1589_v43 = vrot.slane %v1588_v42, 1 }
 0x4c9   : > { %v1590_v44 = vmax.f32 %v1588_v42, %v1589_v43  ;;  %v2920_v42 = vld [vmem:[%s3473_s6] sm:$0xff]  }
 0x4cb   : > { %v1598_v45 = vsub.f32 %v1582_v30, %v1590_v44 }
 0x4cd   : > { %v1600_v46 = vmul.f32 1.442695, %v1598_v45 }
 0x4cf   : > { %2961 = vpow2.f32 %v1600_v46 }
 0x4dc   : > { %v2962_v47 = vpop.eup %2961 }
 0x4dd   : > { %v1604_v48 = vsel %vm778_vm1, %v2962_v47, 0.0 }
 0x4de   : > { %v1605_v49 = vrot.slane %v1604_v48, 4 }
 0x4e0   : > { %v1606_v50 = vadd.f32 %v1605_v49, %v1604_v48  ;;  %v2868_v48 = vpop.permute.xlu0 %2867 }
 0x4e2   : > { %v1607_v51 = vrot.slane %v1606_v50, 2 }
 0x4e4   : > { %v1608_v52 = vadd.f32 %v1607_v51, %v1606_v50  ;;  %v2870_v50 = vunpack.i.h.bf16 %v2868_v48  ;;  %v2869_v51 = vunpack.i.l.bf16 %v2868_v48 }
 0x4e6   : > { %v1609_v53 = vrot.slane %v1608_v52, 1 }
 0x4e8   : > { %v1610_v54 = vadd.f32 %v1609_v53, %v1608_v52 }
 0x4ea   : > { %2963 = vrcp.f32 %v1610_v54 }
 0x4f7   : > { %v2964_v55 = vpop.eup %2963 }
 0x4f8   : > { %v1620_v56 = vmul.f32 %v2964_v55, %v2962_v47  ;;  %v1745_v55 = vsel %vm778_vm1, %v3633_v40, %v2870_v50 }
 0x4fa   : > { %v1622_v57 = vpack.c.bf16 %v1620_v56, %v1620_v56  ;;  %v1744_v56 = vsel %vm778_vm1, %v3631_v36, %v2869_v51 }
 0x4fc   : > { %2663 = vmatmul.mubr.msk.bf16.vlgmr.msra.gmra.mxu0 %vm778_vm1, %v1622_v57 }
 0x4fd   : > { %2688 = vmatprep.mubr.msk.bf16.mxu0 %vm3230_vm0, %v3228_v4  ;;  %2673 = vmatpush3.bf16.msra.mxu0 %v2913_v31 }
 0x4fe   : > { %2674 = vmatprep.subr.bf16.mxu0 %v3228_v4 }
 0x501   : > { %2675 = vmatpush3.bf16.msra.mxu0 %v2914_v33 }
 0x502   : > { %2676 = vmatprep.subr.bf16.mxu0 %v3228_v4 }
 0x505   : > { %2677 = vmatpush3.bf16.msra.mxu0 %v2915_v35 }
 0x506   : > { %2678 = vmatprep.subr.bf16.mxu0 %v3228_v4 }
 0x509   : > { %2679 = vmatpush3.bf16.msra.mxu0 %v2916_v37 }
 0x50a   : > { %2680 = vmatprep.subr.bf16.mxu0 %v3228_v4 }
 0x50d   : > { %2681 = vmatpush3.bf16.msra.mxu0 %v2917_v38 }
 0x50e   : > { %2682 = vmatprep.subr.bf16.mxu0 %v3228_v4 }
 0x511   : > { %2683 = vmatpush3.bf16.msra.mxu0 %v2918_v39 }
 0x512   : > { %2684 = vmatprep.subr.bf16.mxu0 %v3228_v4 }
 0x515   : > { %2685 = vmatpush3.bf16.msra.mxu0 %v2919_v41 }
 0x516   : > { %2686 = vmatprep.subr.bf16.mxu0 %v3228_v4 }
 0x519   : > { %2687 = vmatpush3.bf16.msra.mxu0 %v2920_v42 }
 0x51a   : > { %2712 = vmatprep.subr.bf16.mxu0 %v3228_v4 }
 0x551   : > { %v1476_v58 = vpop.f32.mrf.mxu1 }
 0x552   : > { %v2871_v60 = vpack.i.bf16 %v1476_v58, %v1428_v23 }
 0x553   : > { %v2646_v61 = vpop.f32.mrf.mxu1 }
 0x554   : > { %2872 = vrot.lane.b32.xlu1 %v2871_v60, %s3235_s1 }
 0x555   : > { %v1479_v62 = vpop.f32.mrf.mxu1 }
 0x557   : > { %v2647_v63 = vpop.f32.mrf.mxu1 }
 0x559   : > { %v1576_v59 = vpop.f32.mrf.mxu1 }
 0x55a   : > { %v1583_v0 = vmul.f32 0.17677669, %v1576_v59 }
 0x55b   : > { %v2658_v1 = vpop.f32.mrf.mxu1 }
 0x55c   : > { %v1591_v2 = vsel %vm778_vm1, %v1583_v0, -inf }
 0x55d   : > { %v1592_v3 = vrot.slane %v1591_v2, 4  ;;  %v1579_v5 = vpop.f32.mrf.mxu1 }
 0x55f   : > { %v1593_v6 = vmax.f32 %v1591_v2, %v1592_v3  ;;  %v2659_v7 = vpop.f32.mrf.mxu1 }
 0x561   : > { %v1594_v8 = vrot.slane %v1593_v6, 2 }
 0x563   : > { %v1595_v9 = vmax.f32 %v1593_v6, %v1594_v8 }
 0x565   : > { %v1596_v10 = vrot.slane %v1595_v9, 1 }
 0x567   : > { %v1597_v11 = vmax.f32 %v1595_v9, %v1596_v10  ;;  %v2921_v9 = vld [vmem:[%s3479_s7 + $0x38] sm:$0xff]   ;;  %v2922_v10 = vld [vmem:[%s3479_s7 + $0x30] sm:$0xff]  }
 0x569   : > { %v1599_v12 = vsub.f32 %v1583_v0, %v1597_v11  ;;  %v1774_v0 = vsub.s32 3, %v3561_v32  ;;  %v2924_v11 = vld [vmem:[%s3479_s7 + $0x20] sm:$0xff]  }
 0x56b   : > { %v1602_v13 = vmul.f32 1.442695, %v1599_v12  ;;  %v1775_v40 = vrot.slane %v3565_v34, %v1774_v0  ;;  %v2925_v12 = vld [vmem:[%s3479_s7 + $0x18] sm:$0xff]  }
 0x56d   : > { %2965 = vpow2.f32 %v1602_v13  ;;  %v2926_v13 = vld [vmem:[%s3479_s7 + $0x10] sm:$0xff]  }
 0x57a   : > { %v2966_v14 = vpop.eup %2965 }
 0x57b   : > { %v1611_v15 = vsel %vm778_vm1, %v2966_v14, 0.0 }
 0x57c   : > { %v1612_v16 = vrot.slane %v1611_v15, 4 }
 0x57e   : > { %v1613_v17 = vadd.f32 %v1612_v16, %v1611_v15  ;;  %v2928_v15 = vld [vmem:[%s3479_s7] sm:$0xff]   ;;  %v2929_v16 = vld [vmem:[%s3481_s21 + $0x38] sm:$0xff]  }
 0x580   : > { %v1614_v18 = vrot.slane %v1613_v17, 2 }
 0x582   : > { %v1615_v19 = vadd.f32 %v1614_v18, %v1613_v17  ;;  %v2930_v17 = vld [vmem:[%s3481_s21 + $0x30] sm:$0xff]   ;;  %v2931_v18 = vld [vmem:[%s3481_s21 + $0x28] sm:$0xff]  }
 0x584   : > { %v1616_v20 = vrot.slane %v1615_v19, 1 }
 0x586   : > { %v1617_v21 = vadd.f32 %v1616_v20, %v1615_v19  ;;  %v2932_v19 = vld [vmem:[%s3481_s21 + $0x20] sm:$0xff]   ;;  %v2933_v20 = vld [vmem:[%s3481_s21 + $0x18] sm:$0xff]  }
 0x588   : > { %2967 = vrcp.f32 %v1617_v21 }
 0x595   : > { %v2968_v22 = vpop.eup %2967 }
 0x596   : > { %v1621_v23 = vmul.f32 %v2968_v22, %v2966_v14  ;;  %v2927_v14 = vld [vmem:[%s3479_s7 + $0x8] sm:$0xff]  }
 0x598   : > { %v1623_v24 = vpack.c.bf16 %v1621_v23, %v1621_v23 }
 0x59a   : > { %2669 = vmatmul.mubr.msk.bf16.vlgmr.msra.gmra.mxu1 %vm778_vm1, %v1623_v24 }
 0x59b   : > { %2708 = vmatprep.mubr.msk.bf16.mxu1 %vm3230_vm0, %v3228_v4  ;;  %2693 = vmatpush3.bf16.msra.mxu1 %v2921_v9 }
 0x59c   : > { %2694 = vmatprep.subr.bf16.mxu1 %v3228_v4 }
 0x59f   : > { %2695 = vmatpush3.bf16.msra.mxu1 %v2922_v10 }
 0x5a0   : > { %2696 = vmatprep.subr.bf16.mxu1 %v3228_v4 }
 0x5bc   : > { %v1666_v25 = vpop.f32.mrf.mxu0 }
 0x5be   : > { %v2664_v26 = vpop.f32.mrf.mxu0 }
 0x5c0   : > { %v1669_v29 = vpop.f32.mrf.mxu0 }
 0x5c2   : > { %v2665_v30 = vpop.f32.mrf.mxu0 }
 0x5c6   : > { %v2873_v49 = vpop.permute.xlu1 %2872 }
 0x5c7   : > { %v2875_v52 = vunpack.i.h.bf16 %v2873_v49  ;;  %v2874_v53 = vunpack.i.l.bf16 %v2873_v49 }
 0x5c9   : > { %v1748_v60 = vsel %vm1746_vm3, %v1745_v55, %v2875_v52  ;;  %v1747_v61 = vsel %vm1746_vm3, %v1744_v56, %v2874_v53 }
 0x65a   : > { %v1714_v43 = vpop.f32.mrf.mxu1 }
 0x65b   : > { %v2876_v44 = vpack.i.bf16 %v1714_v43, %v1666_v25  ;;  %v1898_v43 = vsub.s32 5, %v3561_v32 }
 0x65c   : > { %v2670_v45 = vpop.f32.mrf.mxu1 }
 0x65d   : > { %2877 = vrot.lane.b32.xlu0 %v2876_v44, %s3236_s14  ;;  %v3746_v45 = vld [vmem:[%s3502_s22] sm:$0xff] }
 0x65e   : > { %v1717_v46 = vpop.f32.mrf.mxu1 }
 0x65f   : > { %v1899_v46 = vrot.slane %v3746_v45, %v1898_v43 }
 0x660   : > { %v2671_v47 = vpop.f32.mrf.mxu1 }
 0x661   : > { %v1904_v47 = vsub.s32 6, %v3561_v32 }
 0x6cf   : > { %v2878_v54 = vpop.permute.xlu0 %2877 }
 0x6d0   : > { %v2880_v57 = vunpack.i.h.bf16 %v2878_v54  ;;  %v2879_v58 = vunpack.i.l.bf16 %v2878_v54  ;;  %v1905_v54 = vrot.slane %v3746_v45, %v1904_v47 }
 0x6d2   : > { %v1751_v62 = vsel %vm1749_vm4, %v1748_v60, %v2880_v57  ;;  %v1750_v63 = vsel %vm1749_vm4, %v1747_v61, %v2879_v58  ;;  %v2934_v60 = vld [vmem:[%s3481_s21 + $0x10] sm:$0xff]   ;;  %v2935_v61 = vld [vmem:[%s3481_s21 + $0x8] sm:$0xff]  }
 0x6d3   : > { %v2452_v59 = vpack.c.bf16 %v1751_v62, %v1750_v63  ;;  %v2936_v62 = vld [vmem:[%s3481_s21] sm:$0xff]  }
 0x6d4   : > { %v2454_v63 = vld [vmem:[%s481_s17] ss:$0 sm:$0xff]  ;;  %s3096_s17 = scalar_lea.vmem %s3095_s10, 512 }
 0x6d5   : > { %2689 = vmatmul.mubr.msk.bf16.vlgmr.msra.gmra.mxu0 %vm2451_vm6, %v2452_v59  ;;  %p3098_p7 = scmp.lt.s32.totalorder %s3096_s17, %s3090_s15 }
 0x6d6   : > { %2728 = vmatprep.mubr.msk.bf16.mxu0 %vm3230_vm0, %v3228_v4  ;;  %2713 = vmatpush3.bf16.msra.mxu0 %v2929_v16 }
 0x6d7   : > { %2714 = vmatprep.subr.bf16.mxu0 %v3228_v4  ;;  %p3099_p9 = por %p3098_p7, %p3097_p1 }
 0x6d9   : > { %p3100_p10 = pnand %p3099_p9, %p3093_p0 }
 0x6da   : > { %2715 = vmatpush3.bf16.msra.mxu0 %v2930_v17 }
 0x6db   : > { %2716 = vmatprep.subr.bf16.mxu0 %v3228_v4 }
 0x6de   : > { %2717 = vmatpush3.bf16.msra.mxu0 %v2931_v18 }
 0x6df   : > { %2718 = vmatprep.subr.bf16.mxu0 %v3228_v4 }
 0x6e2   : > { %2719 = vmatpush3.bf16.msra.mxu0 %v2932_v19 }
 0x6e3   : > { %2720 = vmatprep.subr.bf16.mxu0 %v3228_v4 }
 0x6e6   : > { %2721 = vmatpush3.bf16.msra.mxu0 %v2933_v20 }
 0x6e7   : > { %2722 = vmatprep.subr.bf16.mxu0 %v3228_v4 }
 0x6ea   : > { %2723 = vmatpush3.bf16.msra.mxu0 %v2934_v60 }
 0x6eb   : > { %2724 = vmatprep.subr.bf16.mxu0 %v3228_v4 }
 0x6ee   : > { %2725 = vmatpush3.bf16.msra.mxu0 %v2935_v61 }
 0x6ef   : > { %2726 = vmatprep.subr.bf16.mxu0 %v3228_v4 }
 0x6f2   : > { %2727 = vmatpush3.bf16.msra.mxu0 %v2936_v62 }
 0x795   : > { %v1858_v1 = vpop.f32.mrf.mxu0 }
 0x796   : > { %v1859_v2 = vadd.f32 %v1858_v1, %v1775_v40 }
 0x797   : > { %v2690_v36 = vpop.f32.mrf.mxu0 }
 0x798   : > { %v3707_v3 = vadd.f32 %v1859_v2, %v3545_v27 }
 0x799   : > { %v1861_v5 = vpop.f32.mrf.mxu0 }
 0x79a   : > { %v1862_v6 = vadd.f32 %v1861_v5, %v1775_v40  ;;  %1867 = vadd.xlane.f32.xlu1 %v3707_v3  ;;  %v1871_v27 = vmul.f32 %v3707_v3, %v3707_v3 }
 0x79b   : > { %v2691_v7 = vpop.f32.mrf.mxu0 }
 0x79c   : > { %v3711_v8 = vadd.f32 %v1862_v6, %v3548_v28  ;;  %v2923_v28 = vld [vmem:[%s3479_s7 + $0x28] sm:$0xff]   ;;  %v2041_v7 = vsub.s32 4, %v3561_v32 }
 0x79d   : > { %2697 = vmatpush3.bf16.msra.mxu1 %v2923_v28 }
 0x79e   : > { %1869 = vadd.xlane.f32.xlu0 %v3711_v8  ;;  %v1872_v34 = vmul.f32 %v3711_v8, %v3711_v8  ;;  %2698 = vmatprep.subr.bf16.mxu1 %v3228_v4 }
 0x7a0   : > { %1875 = vadd.xlane.f32.xlu1 %v1872_v34 }
 0x7a1   : > { %2699 = vmatpush3.bf16.msra.mxu1 %v2924_v11 }
 0x7a2   : > { %1873 = vadd.xlane.f32.xlu0 %v1871_v27  ;;  %2700 = vmatprep.subr.bf16.mxu1 %v3228_v4 }
 0x7a5   : > { %2701 = vmatpush3.bf16.msra.mxu1 %v2925_v12 }
 0x7a6   : > { %2702 = vmatprep.subr.bf16.mxu1 %v3228_v4 }
 0x7a9   : > { %2703 = vmatpush3.bf16.msra.mxu1 %v2926_v13 }
 0x7aa   : > { %2704 = vmatprep.subr.bf16.mxu1 %v3228_v4 }
 0x7ad   : > { %2705 = vmatpush3.bf16.msra.mxu1 %v2927_v14 }
 0x7ae   : > { %2706 = vmatprep.subr.bf16.mxu1 %v3228_v4  ;;  %v2042_v4 = vrot.slane %v3746_v45, %v2041_v7 }
 0x7b1   : > { %2707 = vmatpush3.bf16.msra.mxu1 %v2928_v15 }
 0x823   : > { %v1868_v21 = vpop.xlane.xlu1 %1867 }
 0x824   : > { %v1878_v23 = vmul.f32 0.03125, %v1868_v21 }
 0x826   : > { %v1882_v31 = vmul.f32 %v1878_v23, %v1878_v23  ;;  %v1888_v49 = vsub.f32 %v3707_v3, %v1878_v23 }
 0x827   : > { %v1870_v22 = vpop.xlane.xlu0 %1869 }
 0x828   : > { %v1879_v24 = vmul.f32 0.03125, %v1870_v22 }
 0x829   : > { %v1876_v25 = vpop.xlane.xlu1 %1875 }
 0x82a   : > { %v1883_v26 = vmul.f32 %v1879_v24, %v1879_v24  ;;  %v1881_v29 = vmul.f32 0.03125, %v1876_v25  ;;  %v1889_v44 = vsub.f32 %v3711_v8, %v1879_v24 }
 0x82b   : > { %v1874_v30 = vpop.xlane.xlu0 %1873 }
 0x82c   : > { %v1885_v33 = vsub.f32 %v1881_v29, %v1883_v26  ;;  %v1880_v35 = vmul.f32 0.03125, %v1874_v30 }
 0x82e   : > { %v1887_v37 = vmax.f32 %v1885_v33, 0.0  ;;  %v1884_v38 = vsub.f32 %v1880_v35, %v1882_v31  ;;  %v2164_v35 = vsub.s32 7, %v3561_v32 }
 0x830   : > { %v1891_v39 = vadd.f32 1e-05, %v1887_v37  ;;  %v1886_v41 = vmax.f32 %v1884_v38, 0.0  ;;  %v2165_v38 = vrot.slane %v3746_v45, %v2164_v35 }
 0x832   : > { %2969 = vrsqrt.f32 %v1891_v39  ;;  %v1890_v42 = vadd.f32 1e-05, %v1886_v41 }
 0x834   : > { %2971 = vrsqrt.f32 %v1890_v42  ;;  %v2471_v42 = vld [vmem:[%s3502_s22 + $0x8] ss:$0 sm:$0xff]  ;;  %s3780_s22 = scalar_lea.sflag [#allocation4], %s465_s12 }
 0x83f   : > { %v2970_v48 = vpop.eup %2969 }
 0x840   : > { %v1895_v50 = vmul.f32 %v2970_v48, %v1889_v44 }
 0x841   : > { %v2972_v51 = vpop.eup %2971 }
 0x842   : > { %v1894_v52 = vmul.f32 %v2972_v51, %v1888_v49  ;;  %v1901_v53 = vmul.f32 %v1899_v46, %v1895_v50 }
 0x844   : > { %v1900_v55 = vmul.f32 %v1899_v46, %v1894_v52  ;;  %v1907_v57 = vadd.f32 %v1905_v54, %v1901_v53 }
 0x846   : > { %v1906_v56 = vadd.f32 %v1905_v54, %v1900_v55 }
 0x848   : > { %v1908_v58 = vpack.c.bf16 %v1907_v57, %v1906_v56 }
 0x84a   : > { %2709 = vmatmul.mubr.bf16.vlgmr.msra.gmra.mxu1 %v1908_v58 }
 0x90a   : > { %v2013_v59 = vpop.f32.mrf.mxu1 }
 0x90b   : > { %v2014_v40 = vadd.f32 %v2454_v63, %v2013_v59 }
 0x90c   : > { %v2710_v0 = vpop.f32.mrf.mxu1 }
 0x90d   : > { %v2020_v3 = vmax.f32 %v2014_v40, 0.0 }
 0x90e   : > { %v2016_v1 = vpop.f32.mrf.mxu1 }
 0x90f   : > { %v2017_v2 = vadd.f32 %v2454_v63, %v2016_v1 }
 0x910   : > { %v2711_v36 = vpop.f32.mrf.mxu1 }
 0x911   : > { %v2021_v5 = vmax.f32 %v2017_v2, 0.0 }
 0x913   : > { %v2022_v6 = vpack.c.bf16 %v2021_v5, %v2020_v3 }
 0x915   : > { %2729 = vmatmul.mubr.bf16.vlgmr.msra.gmra.mxu0 %v2022_v6 }
 0x9d5   : > { %v2125_v8 = vpop.f32.mrf.mxu0 }
 0x9d6   : > { %v2126_v34 = vadd.f32 %v2125_v8, %v2042_v4 }
 0x9d7   : > { %v2730_v27 = vpop.f32.mrf.mxu0 }
 0x9d8   : > { %v2132_v9 = vadd.f32 %v2126_v34, %v1906_v56 }
 0x9d9   : > { %v2128_v10 = vpop.f32.mrf.mxu0 }
 0x9da   : > { %v2129_v28 = vadd.f32 %v2128_v10, %v2042_v4  ;;  %2134 = vadd.xlane.f32.xlu0 %v2132_v9  ;;  %v2138_v13 = vmul.f32 %v2132_v9, %v2132_v9 }
 0x9db   : > { %v2731_v11 = vpop.f32.mrf.mxu0 }
 0x9dc   : > { %v2133_v12 = vadd.f32 %v2129_v28, %v1907_v57 }
 0x9de   : > { %2140 = vadd.xlane.f32.xlu0 %v2138_v13  ;;  %2136 = vadd.xlane.f32.xlu1 %v2133_v12  ;;  %v2139_v14 = vmul.f32 %v2133_v12, %v2133_v12 }
 0x9e2   : > { %2142 = vadd.xlane.f32.xlu1 %v2139_v14 }
 0xa63   : > { %v2135_v15 = vpop.xlane.xlu0 %2134 }
 0xa64   : > { %v2144_v16 = vmul.f32 0.03125, %v2135_v15 }
 0xa66   : > { %v2148_v19 = vmul.f32 %v2144_v16, %v2144_v16  ;;  %v2154_v37 = vsub.f32 %v2132_v9, %v2144_v16 }
 0xa67   : > { %v2141_v17 = vpop.xlane.xlu0 %2140  ;;  %v2137_v18 = vpop.xlane.xlu1 %2136 }
 0xa68   : > { %v2146_v20 = vmul.f32 0.03125, %v2141_v17  ;;  %v2145_v21 = vmul.f32 0.03125, %v2137_v18 }
 0xa6a   : > { %v2150_v22 = vsub.f32 %v2146_v20, %v2148_v19  ;;  %v2149_v25 = vmul.f32 %v2145_v21, %v2145_v21  ;;  %v2155_v43 = vsub.f32 %v2133_v12, %v2145_v21 }
 0xa6b   : > { %v2143_v23 = vpop.xlane.xlu1 %2142 }
 0xa6c   : > { %v2152_v24 = vmax.f32 %v2150_v22, 0.0  ;;  %v2147_v26 = vmul.f32 0.03125, %v2143_v23 }
 0xa6e   : > { %v2156_v29 = vadd.f32 1e-05, %v2152_v24  ;;  %v2151_v30 = vsub.f32 %v2147_v26, %v2149_v25 }
 0xa70   : > { %2973 = vrsqrt.f32 %v2156_v29  ;;  %v2153_v31 = vmax.f32 %v2151_v30, 0.0 }
 0xa72   : > { %v2157_v33 = vadd.f32 1e-05, %v2153_v31 }
 0xa74   : > { %2975 = vrsqrt.f32 %v2157_v33 }
 0xa7d   : > { %v2974_v39 = vpop.eup %2973 }
 0xa7e   : > { %v2160_v41 = vmul.f32 %v2974_v39, %v2154_v37 }
 0xa80   : > { %v2166_v44 = vmul.f32 %v2165_v38, %v2160_v41 }
 0xa81   : > { %v2976_v46 = vpop.eup %2975 }
 0xa82   : > { %v2161_v47 = vmul.f32 %v2976_v46, %v2155_v43  ;;  %v2172_v48 = vadd.f32 %v2471_v42, %v2166_v44 }
 0xa84   : > { %v2167_v49 = vmul.f32 %v2165_v38, %v2161_v47  ;;  %2174 = vst [vmem:[%s3508_s27] sm:$0xff] %v2172_v48 }
 0xa86   : > { %v2173_v32 = vadd.f32 %v2471_v42, %v2167_v49 }
 0xa88   : > { %2175 = vst [vmem:[%s3508_s27 + $0x8] sm:$0xff] %v2173_v32 }
 0xa89   : > { %3103 = shalt.err (!%p3100_p10)
}
 0xa8a   : > { %s3104_s12 = scalar_lea.hbm %s3773_s13, 256  ;;  %s3108_s18 = scalar_lea.hbm %s3893_s16, 512 }
 0xa8b   : > { %p3105_p5 = scmp.ne.s32.totalorder %s3773_s13, %s3104_s12  ;;  %p3109_p3 = scmp.lt.s32.totalorder %s3773_s13, %s3893_s16 }
 0xa8c   : > { %p3110_p8 = scmp.lt.s32.totalorder %s3108_s18, %s3104_s12 }
 0xa8d   : > { %p3106_p11 = pnand %p3105_p5, %p3371_p12 }
 0xa8e   : > { %p3111_p6 = por %p3110_p8, %p3109_p3 }
 0xa8f   : > { %p3107_p4 = pneg %p3106_p11 }
 0xa91   : > { %p3112_p13 = pnand %p3111_p6, %p3107_p4 }
 0xa93   : > { %3115 = shalt.err (!%p3112_p13)
}
 0xa94   : > { %s3238_s14 = smov 128  }
 0xa95   : > { %2743 = dma.vmem_to_hbm [thread:$0]  (%p3371_p12), %s3775_s19, 256, %s3773_s13, %s3780_s22, %s3238_s14, %s3238_s14, %s3234_s2  }
 0xa96 PF: > { %s3894_s6 = sld [smem:[#allocation15_spill]]  ;;  %p2763_p0 = scmp.ge.s32.totalorder %s3218_s11, 2 }
 0xa98   : > { %p2759_p1 = pnand %p2763_p0, %p3381_p2 }
 0xa9a   : > { %p2760_p7 = pneg %p2759_p1 }
 0xa9c   : > { %s2205_s20 = sand.u32 1, %s3894_s6  }
 0xa9d   : > { %s2206_s24 = scalar_lea.sflag [#allocation4], %s2205_s20 }
 0xa9e   : > { %3173 = dma.done.wait (%p2760_p7), %s2206_s24, 256  }
 0xa9f   : > { %3175 = vsyncadd (%p2760_p7), %s2206_s24, 4294967040  ;;  %s29_s11 = sadd.s32 1, %s3218_s11   ;;  %s3896_s21 = sld [smem:[#allocation16_spill]] }
 0xaa0   : > { %p26_p9 = scmp.ge.s32.totalorder %s29_s11, 6   ;;  %s3897_s26 = sld [smem:[#allocation22_spill]] }
 0xaa1   : > { %s3898_s2 = sld [smem:[#allocation17_spill]]  ;;  %s3903_s24 = smov %s3182_s25 }
 0xaa2   : > { %s3899_s29 = sld [smem:[#allocation21_spill]]  ;;  %s3905_s27 = smov %s3194_s28 }
 0xaa3   : > { %s3900_s8 = sld [smem:[#allocation18_spill]]  ;;  %s3907_s30 = smov %s3210_s9 }
 0xaa4   : > { %s3901_s19 = sld [smem:[#allocation19_spill]] }
 0xaa5   : > { %s3902_s10 = sld [smem:[#allocation20_spill]]  ;;  %s3904_s25 = smov %s3896_s21 }
 0xaa6   :  { %28 = sbr.rel (!%p26_p9) target bundleno = 19 (0x13), region = 143 }
 0xaa7   : > { %s3906_s28 = smov %s3898_s2 }
 0xaaa   : > { %s3908_s9 = smov %s3901_s19 }
 0xaab   :  { %2211 = vsyncpa [#allocation3], 1 }
 0xaac   :  { %2213 = vsyncpa [#allocation3 + $0x1], 1 }
 0xaad   :  { %2214 = vsyncpa [#allocation6], 1 }
 0xaae   :  { %2216 = vsyncpa [#allocation6 + $0x1], 1 }
 0xaaf   :  { %2217 = vsyncpa [#allocation9], 1 }
 0xab0   :  { %2219 = vsyncpa [#allocation9 + $0x1], 1 }
 0xab1   :  { %2220 = vsyncpa [#allocation4], 1 }
 0xab2   :  { %2222 = vsyncpa [#allocation4 + $0x1], 1 }

</bundles_post_ra>
